<compile_context>
chip_gen: v7x
topology: tpu7x:2x2x1
jax: 0.10.0
libtpu: 0.0.40
codegen_flags: <defaults>
</compile_context>

<pallas_src>
import jax
import jax.numpy as jnp
from jax.experimental import pallas as pl
from jax.experimental.pallas import tpu as pltpu  # noqa: F401  (memory spaces if needed)


# --------------------------- fused LSTM + fc kernel ---------------------------

def _make_fused_kernel(num_layers, hidden_size):
    H = hidden_size

    def kernel(*refs):
        # refs = (x, [w_ih_t, w_hh_t, bias] * num_layers, fc_w_pad, fc_b_pad, out)
        x_ref = refs[0]
        wfc_ref = refs[1 + 3 * num_layers]
        bfc_ref = refs[2 + 3 * num_layers]
        out_ref = refs[3 + 3 * num_layers]

        T = x_ref.shape[0]
        B = x_ref.shape[1]

        # Hoist all weights out of the time loop (loaded once, VMEM-resident).
        wih = [refs[1 + 3 * l][...] for l in range(num_layers)]   # (D_in_l, 4H)
        whh = [refs[2 + 3 * l][...] for l in range(num_layers)]   # (H, 4H)
        bias = [refs[3 + 3 * l][...] for l in range(num_layers)]  # (1, 4H)

        def sigmoid(z):
            # Single-EUP form: sigmoid(z) == 0.5 * tanh(0.5 * z) + 0.5
            return 0.5 * jnp.tanh(0.5 * z) + 0.5

        def lstm_cell(x_t, h, c, w_i, w_h, b):
            z = (jnp.dot(x_t, w_i, preferred_element_type=jnp.float32)
                 + jnp.dot(h, w_h, preferred_element_type=jnp.float32)
                 + b)                                   # (B, 4H)  gates: i,f,g,o
            i_g = sigmoid(z[:, 0 * H:1 * H])
            f_g = sigmoid(z[:, 1 * H:2 * H])
            g_g = jnp.tanh(z[:, 2 * H:3 * H])
            o_g = sigmoid(z[:, 3 * H:4 * H])
            c_new = f_g * c + i_g * g_g
            h_new = o_g * jnp.tanh(c_new)
            return h_new, c_new

        def step(t, carry):
            inp = x_ref[t]                              # (B, D_in) — leading-dim dyn index
            new_carry = []
            for l in range(num_layers):
                h, c = carry[l]
                h, c = lstm_cell(inp, h, c, wih[l], whh[l], bias[l])
                new_carry.append((h, c))
                inp = h                                 # feed next layer at same timestep
            return tuple(new_carry)

        zeros = jnp.zeros((B, H), jnp.float32)
        init = tuple((zeros, zeros) for _ in range(num_layers))
        final = jax.lax.fori_loop(0, T, step, init, unroll=True)
        h_last = final[num_layers - 1][0]               # (B, H) == out[:, -1, :]

        # Fused fc, written to a lane-dense (B, Kpad) slab (unmasked stores).
        out_ref[...] = (jnp.dot(h_last, wfc_ref[...],
                                preferred_element_type=jnp.float32)
                        + bfc_ref[...])

    return kernel


# ------------------------------- Model wrapper --------------------------------

def init_params(key, input_size, hidden_size, num_layers, num_keys):
    """Deterministic init mimicking PyTorch's U(-1/sqrt(H), 1/sqrt(H))."""
    H = hidden_size
    k = 1.0 / jnp.sqrt(jnp.float32(H))
    params = {"lstm": [], "hidden_size": H, "num_keys": num_keys}
    d_in = input_size
    for _ in range(num_layers):
        key, k1, k2, k3, k4 = jax.random.split(key, 5)
        w_ih = jax.random.uniform(k1, (4 * H, d_in), jnp.float32, -k, k)
        w_hh = jax.random.uniform(k2, (4 * H, H), jnp.float32, -k, k)
        b_ih = jax.random.uniform(k3, (4 * H,), jnp.float32, -k, k)
        b_hh = jax.random.uniform(k4, (4 * H,), jnp.float32, -k, k)
        params["lstm"].append({
            "w_ih_t": w_ih.T,                                  # (D_in, 4H)
            "w_hh_t": w_hh.T,                                  # (H, 4H)
            "bias": (b_ih + b_hh).reshape(1, 4 * H),           # (1, 4H)
        })
        d_in = H
    key, k5, k6 = jax.random.split(key, 3)
    fc_w = jax.random.uniform(k5, (num_keys, H), jnp.float32, -k, k)
    fc_b = jax.random.uniform(k6, (num_keys,), jnp.float32, -k, k)
    params["fc_w_t"] = fc_w.T                          # (H, K)   (reference)
    params["fc_b"] = fc_b.reshape(1, num_keys)         # (1, K)   (reference)
    # Lane-dense padded fc params for the kernel (pad K up to a multiple of 128).
    k_pad = ((num_keys + 127) // 128) * 128
    params["fc_w_pad"] = jnp.zeros((H, k_pad), jnp.float32).at[:, :num_keys].set(fc_w.T)
    params["fc_b_pad"] = jnp.zeros((1, k_pad), jnp.float32).at[:, :num_keys].set(
        fc_b.reshape(1, num_keys))
    return params


def model_forward(x_bld, params):
    """x_bld: (B, T, input_size) -> (B, num_keys)."""
    B, T, D = x_bld.shape
    H = params["hidden_size"]
    K = params["num_keys"]
    Kp = params["fc_w_pad"].shape[1]
    num_layers = len(params["lstm"])

    # Time-major layout so the in-kernel timestep pick is a leading-dim dynamic
    # index (cheap address math).  x is ~1 KB here, so this is pure plumbing.
    x_tbd = jnp.transpose(x_bld, (1, 0, 2)).astype(jnp.float32)

    args = [x_tbd]
    in_specs = [pl.BlockSpec((T, B, D), lambda: (0, 0, 0))]
    for layer in params["lstm"]:
        args += [layer["w_ih_t"], layer["w_hh_t"], layer["bias"]]
        in_specs += [
            pl.BlockSpec(layer["w_ih_t"].shape, lambda: (0, 0)),
            pl.BlockSpec(layer["w_hh_t"].shape, lambda: (0, 0)),
            pl.BlockSpec(layer["bias"].shape, lambda: (0, 0)),
        ]
    args += [params["fc_w_pad"], params["fc_b_pad"]]
    in_specs += [pl.BlockSpec((H, Kp), lambda: (0, 0)),
                 pl.BlockSpec((1, Kp), lambda: (0, 0))]

    out_padded = pl.pallas_call(
        _make_fused_kernel(num_layers, H),
        out_shape=jax.ShapeDtypeStruct((B, Kp), jnp.float32),
        in_specs=in_specs,
        out_specs=pl.BlockSpec((B, Kp), lambda: (0, 0)),
    )(*args)
    return out_padded[:, :K]


# ------------------------------ Pure-JAX reference -----------------------------

def _reference_forward(x_bld, params):
    H = params["hidden_size"]
    h_seq = jnp.transpose(x_bld, (1, 0, 2)).astype(jnp.float32)  # (T, B, D)
    B = h_seq.shape[1]
    for layer in params["lstm"]:
        w_ih_t, w_hh_t, bias = layer["w_ih_t"], layer["w_hh_t"], layer["bias"]

        def step(carry, x_t):
            h, c = carry
            z = x_t @ w_ih_t + h @ w_hh_t + bias
            i = jax.nn.sigmoid(z[:, :H])
            f = jax.nn.sigmoid(z[:, H:2 * H])
            g = jnp.tanh(z[:, 2 * H:3 * H])
            o = jax.nn.sigmoid(z[:, 3 * H:])
            c = f * c + i * g
            h = o * jnp.tanh(c)
            return (h, c), h

        init = (jnp.zeros((B, H), jnp.float32), jnp.zeros((B, H), jnp.float32))
        _, h_seq = jax.lax.scan(step, init, h_seq)
    return h_seq[-1] @ params["fc_w_t"] + params["fc_b"]


if __name__ == "__main__":
    B, T, INPUT_SIZE, HIDDEN, NUM_LAYERS, NUM_KEYS = 2, 8, 16, 32, 2, 10

    key = jax.random.PRNGKey(0)
    key, xk = jax.random.split(key)
    x = jax.random.normal(xk, (B, T, INPUT_SIZE), dtype=jnp.float32)

    params = init_params(key, INPUT_SIZE, HIDDEN, NUM_LAYERS, NUM_KEYS)

    out = jax.block_until_ready(model_forward(x, params))
    ref = jax.block_until_ready(_reference_forward(x, params))

    assert out.shape == (B, NUM_KEYS)
    assert jnp.allclose(out, ref, atol=1e-4, rtol=1e-4), "mismatch vs JAX reference"

    print("KERNEL_OK")
</pallas_src>

<mosaic_0001>
module attributes {stable_mosaic.version = 11 : i64} {
  func.func @kernel(%arg0: memref<8x2x16xf32, #tpu.memory_space<vmem>>, %arg1: memref<16x128xf32, #tpu.memory_space<vmem>>, %arg2: memref<32x128xf32, #tpu.memory_space<vmem>>, %arg3: memref<1x128xf32, #tpu.memory_space<vmem>>, %arg4: memref<32x128xf32, #tpu.memory_space<vmem>>, %arg5: memref<32x128xf32, #tpu.memory_space<vmem>>, %arg6: memref<1x128xf32, #tpu.memory_space<vmem>>, %arg7: memref<32x128xf32, #tpu.memory_space<vmem>>, %arg8: memref<1x128xf32, #tpu.memory_space<vmem>>, %arg9: memref<2x128xf32, #tpu.memory_space<vmem>>) attributes {dimension_semantics = [], scalar_prefetch = 0 : i64, scratch_operands = 0 : i64, tpu.core_type = #tpu.core_type<tc>} {
    %c0 = arith.constant 0 : index
    %c0_0 = arith.constant 0 : index
    %0 = vector.load %arg1[%c0, %c0_0] : memref<16x128xf32, #tpu.memory_space<vmem>>, vector<16x128xf32>
    %c0_1 = arith.constant 0 : index
    %c0_2 = arith.constant 0 : index
    %1 = vector.load %arg4[%c0_1, %c0_2] : memref<32x128xf32, #tpu.memory_space<vmem>>, vector<32x128xf32>
    %c0_3 = arith.constant 0 : index
    %c0_4 = arith.constant 0 : index
    %2 = vector.load %arg2[%c0_3, %c0_4] : memref<32x128xf32, #tpu.memory_space<vmem>>, vector<32x128xf32>
    %c0_5 = arith.constant 0 : index
    %c0_6 = arith.constant 0 : index
    %3 = vector.load %arg5[%c0_5, %c0_6] : memref<32x128xf32, #tpu.memory_space<vmem>>, vector<32x128xf32>
    %c0_7 = arith.constant 0 : index
    %c0_8 = arith.constant 0 : index
    %4 = vector.load %arg3[%c0_7, %c0_8] : memref<1x128xf32, #tpu.memory_space<vmem>>, vector<1x128xf32>
    %c0_9 = arith.constant 0 : index
    %c0_10 = arith.constant 0 : index
    %5 = vector.load %arg6[%c0_9, %c0_10] : memref<1x128xf32, #tpu.memory_space<vmem>>, vector<1x128xf32>
    %cst = arith.constant 0.000000e+00 : f32
    %6 = vector.broadcast %cst : f32 to vector<2x32xf32>
    %c0_i32 = arith.constant 0 : i32
    %7 = arith.index_cast %c0_i32 : i32 to index
    %c0_11 = arith.constant 0 : index
    %c0_12 = arith.constant 0 : index
    %8 = vector.load %arg0[%7, %c0_11, %c0_12] : memref<8x2x16xf32, #tpu.memory_space<vmem>>, vector<1x2x16xf32>
    %9 = vector.shape_cast %8 : vector<1x2x16xf32> to vector<2x16xf32>
    %cst_13 = arith.constant dense<0.000000e+00> : vector<2x128xf32>
    %10 = tpu.matmul %9, %0, %cst_13 {dimension_numbers = #tpu.dot_dimension_numbers<[1], [0], [0], [1], [0, 0, 1, 1], [], []>} : vector<2x16xf32>, vector<16x128xf32>, vector<2x128xf32> -> vector<2x128xf32>
    %cst_14 = arith.constant dense<0.000000e+00> : vector<2x128xf32>
    %11 = tpu.matmul %6, %2, %cst_14 {dimension_numbers = #tpu.dot_dimension_numbers<[1], [0], [0], [1], [0, 0, 1, 1], [], []>} : vector<2x32xf32>, vector<32x128xf32>, vector<2x128xf32> -> vector<2x128xf32>
    %12 = arith.addf %10, %11 : vector<2x128xf32>
    %13 = vector.broadcast %4 : vector<1x128xf32> to vector<2x128xf32>
    %14 = arith.addf %12, %13 : vector<2x128xf32>
    %15 = vector.extract_strided_slice %14 {offsets = [0, 0], sizes = [2, 32], strides = [1, 1]} : vector<2x128xf32> to vector<2x32xf32>
    %cst_15 = arith.constant 5.000000e-01 : f32
    %16 = vector.broadcast %cst_15 : f32 to vector<2x32xf32>
    %17 = arith.mulf %16, %15 : vector<2x32xf32>
    %18 = math.tanh %17 : vector<2x32xf32>
    %cst_16 = arith.constant 5.000000e-01 : f32
    %19 = vector.broadcast %cst_16 : f32 to vector<2x32xf32>
    %20 = arith.mulf %19, %18 : vector<2x32xf32>
    %cst_17 = arith.constant 5.000000e-01 : f32
    %21 = vector.broadcast %cst_17 : f32 to vector<2x32xf32>
    %22 = arith.addf %20, %21 : vector<2x32xf32>
    %23 = vector.extract_strided_slice %14 {offsets = [0, 32], sizes = [2, 32], strides = [1, 1]} : vector<2x128xf32> to vector<2x32xf32>
    %cst_18 = arith.constant 5.000000e-01 : f32
    %24 = vector.broadcast %cst_18 : f32 to vector<2x32xf32>
    %25 = arith.mulf %24, %23 : vector<2x32xf32>
    %26 = math.tanh %25 : vector<2x32xf32>
    %cst_19 = arith.constant 5.000000e-01 : f32
    %27 = vector.broadcast %cst_19 : f32 to vector<2x32xf32>
    %28 = arith.mulf %27, %26 : vector<2x32xf32>
    %cst_20 = arith.constant 5.000000e-01 : f32
    %29 = vector.broadcast %cst_20 : f32 to vector<2x32xf32>
    %30 = arith.addf %28, %29 : vector<2x32xf32>
    %31 = vector.extract_strided_slice %14 {offsets = [0, 64], sizes = [2, 32], strides = [1, 1]} : vector<2x128xf32> to vector<2x32xf32>
    %32 = math.tanh %31 : vector<2x32xf32>
    %33 = vector.extract_strided_slice %14 {offsets = [0, 96], sizes = [2, 32], strides = [1, 1]} : vector<2x128xf32> to vector<2x32xf32>
    %cst_21 = arith.constant 5.000000e-01 : f32
    %34 = vector.broadcast %cst_21 : f32 to vector<2x32xf32>
    %35 = arith.mulf %34, %33 : vector<2x32xf32>
    %36 = math.tanh %35 : vector<2x32xf32>
    %cst_22 = arith.constant 5.000000e-01 : f32
    %37 = vector.broadcast %cst_22 : f32 to vector<2x32xf32>
    %38 = arith.mulf %37, %36 : vector<2x32xf32>
    %cst_23 = arith.constant 5.000000e-01 : f32
    %39 = vector.broadcast %cst_23 : f32 to vector<2x32xf32>
    %40 = arith.addf %38, %39 : vector<2x32xf32>
    %41 = arith.mulf %30, %6 : vector<2x32xf32>
    %42 = arith.mulf %22, %32 : vector<2x32xf32>
    %43 = arith.addf %41, %42 : vector<2x32xf32>
    %44 = math.tanh %43 : vector<2x32xf32>
    %45 = arith.mulf %40, %44 : vector<2x32xf32>
    %cst_24 = arith.constant dense<0.000000e+00> : vector<2x128xf32>
    %46 = tpu.matmul %45, %1, %cst_24 {dimension_numbers = #tpu.dot_dimension_numbers<[1], [0], [0], [1], [0, 0, 1, 1], [], []>} : vector<2x32xf32>, vector<32x128xf32>, vector<2x128xf32> -> vector<2x128xf32>
    %cst_25 = arith.constant dense<0.000000e+00> : vector<2x128xf32>
    %47 = tpu.matmul %6, %3, %cst_25 {dimension_numbers = #tpu.dot_dimension_numbers<[1], [0], [0], [1], [0, 0, 1, 1], [], []>} : vector<2x32xf32>, vector<32x128xf32>, vector<2x128xf32> -> vector<2x128xf32>
    %48 = arith.addf %46, %47 : vector<2x128xf32>
    %49 = vector.broadcast %5 : vector<1x128xf32> to vector<2x128xf32>
    %50 = arith.addf %48, %49 : vector<2x128xf32>
    %51 = vector.extract_strided_slice %50 {offsets = [0, 0], sizes = [2, 32], strides = [1, 1]} : vector<2x128xf32> to vector<2x32xf32>
    %cst_26 = arith.constant 5.000000e-01 : f32
    %52 = vector.broadcast %cst_26 : f32 to vector<2x32xf32>
    %53 = arith.mulf %52, %51 : vector<2x32xf32>
    %54 = math.tanh %53 : vector<2x32xf32>
    %cst_27 = arith.constant 5.000000e-01 : f32
    %55 = vector.broadcast %cst_27 : f32 to vector<2x32xf32>
    %56 = arith.mulf %55, %54 : vector<2x32xf32>
    %cst_28 = arith.constant 5.000000e-01 : f32
    %57 = vector.broadcast %cst_28 : f32 to vector<2x32xf32>
    %58 = arith.addf %56, %57 : vector<2x32xf32>
    %59 = vector.extract_strided_slice %50 {offsets = [0, 32], sizes = [2, 32], strides = [1, 1]} : vector<2x128xf32> to vector<2x32xf32>
    %cst_29 = arith.constant 5.000000e-01 : f32
    %60 = vector.broadcast %cst_29 : f32 to vector<2x32xf32>
    %61 = arith.mulf %60, %59 : vector<2x32xf32>
    %62 = math.tanh %61 : vector<2x32xf32>
    %cst_30 = arith.constant 5.000000e-01 : f32
    %63 = vector.broadcast %cst_30 : f32 to vector<2x32xf32>
    %64 = arith.mulf %63, %62 : vector<2x32xf32>
    %cst_31 = arith.constant 5.000000e-01 : f32
    %65 = vector.broadcast %cst_31 : f32 to vector<2x32xf32>
    %66 = arith.addf %64, %65 : vector<2x32xf32>
    %67 = vector.extract_strided_slice %50 {offsets = [0, 64], sizes = [2, 32], strides = [1, 1]} : vector<2x128xf32> to vector<2x32xf32>
    %68 = math.tanh %67 : vector<2x32xf32>
    %69 = vector.extract_strided_slice %50 {offsets = [0, 96], sizes = [2, 32], strides = [1, 1]} : vector<2x128xf32> to vector<2x32xf32>
    %cst_32 = arith.constant 5.000000e-01 : f32
    %70 = vector.broadcast %cst_32 : f32 to vector<2x32xf32>
    %71 = arith.mulf %70, %69 : vector<2x32xf32>
    %72 = math.tanh %71 : vector<2x32xf32>
    %cst_33 = arith.constant 5.000000e-01 : f32
    %73 = vector.broadcast %cst_33 : f32 to vector<2x32xf32>
    %74 = arith.mulf %73, %72 : vector<2x32xf32>
    %cst_34 = arith.constant 5.000000e-01 : f32
    %75 = vector.broadcast %cst_34 : f32 to vector<2x32xf32>
    %76 = arith.addf %74, %75 : vector<2x32xf32>
    %77 = arith.mulf %66, %6 : vector<2x32xf32>
    %78 = arith.mulf %58, %68 : vector<2x32xf32>
    %79 = arith.addf %77, %78 : vector<2x32xf32>
    %80 = math.tanh %79 : vector<2x32xf32>
    %81 = arith.mulf %76, %80 : vector<2x32xf32>
    %c1_i32 = arith.constant 1 : i32
    %82 = arith.index_cast %c1_i32 : i32 to index
    %c0_35 = arith.constant 0 : index
    %c0_36 = arith.constant 0 : index
    %83 = vector.load %arg0[%82, %c0_35, %c0_36] : memref<8x2x16xf32, #tpu.memory_space<vmem>>, vector<1x2x16xf32>
    %84 = vector.shape_cast %83 : vector<1x2x16xf32> to vector<2x16xf32>
    %cst_37 = arith.constant dense<0.000000e+00> : vector<2x128xf32>
    %85 = tpu.matmul %84, %0, %cst_37 {dimension_numbers = #tpu.dot_dimension_numbers<[1], [0], [0], [1], [0, 0, 1, 1], [], []>} : vector<2x16xf32>, vector<16x128xf32>, vector<2x128xf32> -> vector<2x128xf32>
    %cst_38 = arith.constant dense<0.000000e+00> : vector<2x128xf32>
    %86 = tpu.matmul %45, %2, %cst_38 {dimension_numbers = #tpu.dot_dimension_numbers<[1], [0], [0], [1], [0, 0, 1, 1], [], []>} : vector<2x32xf32>, vector<32x128xf32>, vector<2x128xf32> -> vector<2x128xf32>
    %87 = arith.addf %85, %86 : vector<2x128xf32>
    %88 = vector.broadcast %4 : vector<1x128xf32> to vector<2x128xf32>
    %89 = arith.addf %87, %88 : vector<2x128xf32>
    %90 = vector.extract_strided_slice %89 {offsets = [0, 0], sizes = [2, 32], strides = [1, 1]} : vector<2x128xf32> to vector<2x32xf32>
    %cst_39 = arith.constant 5.000000e-01 : f32
    %91 = vector.broadcast %cst_39 : f32 to vector<2x32xf32>
    %92 = arith.mulf %91, %90 : vector<2x32xf32>
    %93 = math.tanh %92 : vector<2x32xf32>
    %cst_40 = arith.constant 5.000000e-01 : f32
    %94 = vector.broadcast %cst_40 : f32 to vector<2x32xf32>
    %95 = arith.mulf %94, %93 : vector<2x32xf32>
    %cst_41 = arith.constant 5.000000e-01 : f32
    %96 = vector.broadcast %cst_41 : f32 to vector<2x32xf32>
    %97 = arith.addf %95, %96 : vector<2x32xf32>
    %98 = vector.extract_strided_slice %89 {offsets = [0, 32], sizes = [2, 32], strides = [1, 1]} : vector<2x128xf32> to vector<2x32xf32>
    %cst_42 = arith.constant 5.000000e-01 : f32
    %99 = vector.broadcast %cst_42 : f32 to vector<2x32xf32>
    %100 = arith.mulf %99, %98 : vector<2x32xf32>
    %101 = math.tanh %100 : vector<2x32xf32>
    %cst_43 = arith.constant 5.000000e-01 : f32
    %102 = vector.broadcast %cst_43 : f32 to vector<2x32xf32>
    %103 = arith.mulf %102, %101 : vector<2x32xf32>
    %cst_44 = arith.constant 5.000000e-01 : f32
    %104 = vector.broadcast %cst_44 : f32 to vector<2x32xf32>
    %105 = arith.addf %103, %104 : vector<2x32xf32>
    %106 = vector.extract_strided_slice %89 {offsets = [0, 64], sizes = [2, 32], strides = [1, 1]} : vector<2x128xf32> to vector<2x32xf32>
    %107 = math.tanh %106 : vector<2x32xf32>
    %108 = vector.extract_strided_slice %89 {offsets = [0, 96], sizes = [2, 32], strides = [1, 1]} : vector<2x128xf32> to vector<2x32xf32>
    %cst_45 = arith.constant 5.000000e-01 : f32
    %109 = vector.broadcast %cst_45 : f32 to vector<2x32xf32>
    %110 = arith.mulf %109, %108 : vector<2x32xf32>
    %111 = math.tanh %110 : vector<2x32xf32>
    %cst_46 = arith.constant 5.000000e-01 : f32
    %112 = vector.broadcast %cst_46 : f32 to vector<2x32xf32>
    %113 = arith.mulf %112, %111 : vector<2x32xf32>
    %cst_47 = arith.constant 5.000000e-01 : f32
    %114 = vector.broadcast %cst_47 : f32 to vector<2x32xf32>
    %115 = arith.addf %113, %114 : vector<2x32xf32>
    %116 = arith.mulf %105, %43 : vector<2x32xf32>
    %117 = arith.mulf %97, %107 : vector<2x32xf32>
    %118 = arith.addf %116, %117 : vector<2x32xf32>
    %119 = math.tanh %118 : vector<2x32xf32>
    %120 = arith.mulf %115, %119 : vector<2x32xf32>
    %cst_48 = arith.constant dense<0.000000e+00> : vector<2x128xf32>
    %121 = tpu.matmul %120, %1, %cst_48 {dimension_numbers = #tpu.dot_dimension_numbers<[1], [0], [0], [1], [0, 0, 1, 1], [], []>} : vector<2x32xf32>, vector<32x128xf32>, vector<2x128xf32> -> vector<2x128xf32>
    %cst_49 = arith.constant dense<0.000000e+00> : vector<2x128xf32>
    %122 = tpu.matmul %81, %3, %cst_49 {dimension_numbers = #tpu.dot_dimension_numbers<[1], [0], [0], [1], [0, 0, 1, 1], [], []>} : vector<2x32xf32>, vector<32x128xf32>, vector<2x128xf32> -> vector<2x128xf32>
    %123 = arith.addf %121, %122 : vector<2x128xf32>
    %124 = vector.broadcast %5 : vector<1x128xf32> to vector<2x128xf32>
    %125 = arith.addf %123, %124 : vector<2x128xf32>
    %126 = vector.extract_strided_slice %125 {offsets = [0, 0], sizes = [2, 32], strides = [1, 1]} : vector<2x128xf32> to vector<2x32xf32>
    %cst_50 = arith.constant 5.000000e-01 : f32
    %127 = vector.broadcast %cst_50 : f32 to vector<2x32xf32>
    %128 = arith.mulf %127, %126 : vector<2x32xf32>
    %129 = math.tanh %128 : vector<2x32xf32>
    %cst_51 = arith.constant 5.000000e-01 : f32
    %130 = vector.broadcast %cst_51 : f32 to vector<2x32xf32>
    %131 = arith.mulf %130, %129 : vector<2x32xf32>
    %cst_52 = arith.constant 5.000000e-01 : f32
    %132 = vector.broadcast %cst_52 : f32 to vector<2x32xf32>
    %133 = arith.addf %131, %132 : vector<2x32xf32>
    %134 = vector.extract_strided_slice %125 {offsets = [0, 32], sizes = [2, 32], strides = [1, 1]} : vector<2x128xf32> to vector<2x32xf32>
    %cst_53 = arith.constant 5.000000e-01 : f32
    %135 = vector.broadcast %cst_53 : f32 to vector<2x32xf32>
    %136 = arith.mulf %135, %134 : vector<2x32xf32>
    %137 = math.tanh %136 : vector<2x32xf32>
    %cst_54 = arith.constant 5.000000e-01 : f32
    %138 = vector.broadcast %cst_54 : f32 to vector<2x32xf32>
    %139 = arith.mulf %138, %137 : vector<2x32xf32>
    %cst_55 = arith.constant 5.000000e-01 : f32
    %140 = vector.broadcast %cst_55 : f32 to vector<2x32xf32>
    %141 = arith.addf %139, %140 : vector<2x32xf32>
    %142 = vector.extract_strided_slice %125 {offsets = [0, 64], sizes = [2, 32], strides = [1, 1]} : vector<2x128xf32> to vector<2x32xf32>
    %143 = math.tanh %142 : vector<2x32xf32>
    %144 = vector.extract_strided_slice %125 {offsets = [0, 96], sizes = [2, 32], strides = [1, 1]} : vector<2x128xf32> to vector<2x32xf32>
    %cst_56 = arith.constant 5.000000e-01 : f32
    %145 = vector.broadcast %cst_56 : f32 to vector<2x32xf32>
    %146 = arith.mulf %145, %144 : vector<2x32xf32>
    %147 = math.tanh %146 : vector<2x32xf32>
    %cst_57 = arith.constant 5.000000e-01 : f32
    %148 = vector.broadcast %cst_57 : f32 to vector<2x32xf32>
    %149 = arith.mulf %148, %147 : vector<2x32xf32>
    %cst_58 = arith.constant 5.000000e-01 : f32
    %150 = vector.broadcast %cst_58 : f32 to vector<2x32xf32>
    %151 = arith.addf %149, %150 : vector<2x32xf32>
    %152 = arith.mulf %141, %79 : vector<2x32xf32>
    %153 = arith.mulf %133, %143 : vector<2x32xf32>
    %154 = arith.addf %152, %153 : vector<2x32xf32>
    %155 = math.tanh %154 : vector<2x32xf32>
    %156 = arith.mulf %151, %155 : vector<2x32xf32>
    %c2_i32 = arith.constant 2 : i32
    %157 = arith.index_cast %c2_i32 : i32 to index
    %c0_59 = arith.constant 0 : index
    %c0_60 = arith.constant 0 : index
    %158 = vector.load %arg0[%157, %c0_59, %c0_60] : memref<8x2x16xf32, #tpu.memory_space<vmem>>, vector<1x2x16xf32>
    %159 = vector.shape_cast %158 : vector<1x2x16xf32> to vector<2x16xf32>
    %cst_61 = arith.constant dense<0.000000e+00> : vector<2x128xf32>
    %160 = tpu.matmul %159, %0, %cst_61 {dimension_numbers = #tpu.dot_dimension_numbers<[1], [0], [0], [1], [0, 0, 1, 1], [], []>} : vector<2x16xf32>, vector<16x128xf32>, vector<2x128xf32> -> vector<2x128xf32>
    %cst_62 = arith.constant dense<0.000000e+00> : vector<2x128xf32>
    %161 = tpu.matmul %120, %2, %cst_62 {dimension_numbers = #tpu.dot_dimension_numbers<[1], [0], [0], [1], [0, 0, 1, 1], [], []>} : vector<2x32xf32>, vector<32x128xf32>, vector<2x128xf32> -> vector<2x128xf32>
    %162 = arith.addf %160, %161 : vector<2x128xf32>
    %163 = vector.broadcast %4 : vector<1x128xf32> to vector<2x128xf32>
    %164 = arith.addf %162, %163 : vector<2x128xf32>
    %165 = vector.extract_strided_slice %164 {offsets = [0, 0], sizes = [2, 32], strides = [1, 1]} : vector<2x128xf32> to vector<2x32xf32>
    %cst_63 = arith.constant 5.000000e-01 : f32
    %166 = vector.broadcast %cst_63 : f32 to vector<2x32xf32>
    %167 = arith.mulf %166, %165 : vector<2x32xf32>
    %168 = math.tanh %167 : vector<2x32xf32>
    %cst_64 = arith.constant 5.000000e-01 : f32
    %169 = vector.broadcast %cst_64 : f32 to vector<2x32xf32>
    %170 = arith.mulf %169, %168 : vector<2x32xf32>
    %cst_65 = arith.constant 5.000000e-01 : f32
    %171 = vector.broadcast %cst_65 : f32 to vector<2x32xf32>
    %172 = arith.addf %170, %171 : vector<2x32xf32>
    %173 = vector.extract_strided_slice %164 {offsets = [0, 32], sizes = [2, 32], strides = [1, 1]} : vector<2x128xf32> to vector<2x32xf32>
    %cst_66 = arith.constant 5.000000e-01 : f32
    %174 = vector.broadcast %cst_66 : f32 to vector<2x32xf32>
    %175 = arith.mulf %174, %173 : vector<2x32xf32>
    %176 = math.tanh %175 : vector<2x32xf32>
    %cst_67 = arith.constant 5.000000e-01 : f32
    %177 = vector.broadcast %cst_67 : f32 to vector<2x32xf32>
    %178 = arith.mulf %177, %176 : vector<2x32xf32>
    %cst_68 = arith.constant 5.000000e-01 : f32
    %179 = vector.broadcast %cst_68 : f32 to vector<2x32xf32>
    %180 = arith.addf %178, %179 : vector<2x32xf32>
    %181 = vector.extract_strided_slice %164 {offsets = [0, 64], sizes = [2, 32], strides = [1, 1]} : vector<2x128xf32> to vector<2x32xf32>
    %182 = math.tanh %181 : vector<2x32xf32>
    %183 = vector.extract_strided_slice %164 {offsets = [0, 96], sizes = [2, 32], strides = [1, 1]} : vector<2x128xf32> to vector<2x32xf32>
    %cst_69 = arith.constant 5.000000e-01 : f32
    %184 = vector.broadcast %cst_69 : f32 to vector<2x32xf32>
    %185 = arith.mulf %184, %183 : vector<2x32xf32>
    %186 = math.tanh %185 : vector<2x32xf32>
    %cst_70 = arith.constant 5.000000e-01 : f32
    %187 = vector.broadcast %cst_70 : f32 to vector<2x32xf32>
    %188 = arith.mulf %187, %186 : vector<2x32xf32>
    %cst_71 = arith.constant 5.000000e-01 : f32
    %189 = vector.broadcast %cst_71 : f32 to vector<2x32xf32>
    %190 = arith.addf %188, %189 : vector<2x32xf32>
    %191 = arith.mulf %180, %118 : vector<2x32xf32>
    %192 = arith.mulf %172, %182 : vector<2x32xf32>
    %193 = arith.addf %191, %192 : vector<2x32xf32>
    %194 = math.tanh %193 : vector<2x32xf32>
    %195 = arith.mulf %190, %194 : vector<2x32xf32>
    %cst_72 = arith.constant dense<0.000000e+00> : vector<2x128xf32>
    %196 = tpu.matmul %195, %1, %cst_72 {dimension_numbers = #tpu.dot_dimension_numbers<[1], [0], [0], [1], [0, 0, 1, 1], [], []>} : vector<2x32xf32>, vector<32x128xf32>, vector<2x128xf32> -> vector<2x128xf32>
    %cst_73 = arith.constant dense<0.000000e+00> : vector<2x128xf32>
    %197 = tpu.matmul %156, %3, %cst_73 {dimension_numbers = #tpu.dot_dimension_numbers<[1], [0], [0], [1], [0, 0, 1, 1], [], []>} : vector<2x32xf32>, vector<32x128xf32>, vector<2x128xf32> -> vector<2x128xf32>
    %198 = arith.addf %196, %197 : vector<2x128xf32>
    %199 = vector.broadcast %5 : vector<1x128xf32> to vector<2x128xf32>
    %200 = arith.addf %198, %199 : vector<2x128xf32>
    %201 = vector.extract_strided_slice %200 {offsets = [0, 0], sizes = [2, 32], strides = [1, 1]} : vector<2x128xf32> to vector<2x32xf32>
    %cst_74 = arith.constant 5.000000e-01 : f32
    %202 = vector.broadcast %cst_74 : f32 to vector<2x32xf32>
    %203 = arith.mulf %202, %201 : vector<2x32xf32>
    %204 = math.tanh %203 : vector<2x32xf32>
    %cst_75 = arith.constant 5.000000e-01 : f32
    %205 = vector.broadcast %cst_75 : f32 to vector<2x32xf32>
    %206 = arith.mulf %205, %204 : vector<2x32xf32>
    %cst_76 = arith.constant 5.000000e-01 : f32
    %207 = vector.broadcast %cst_76 : f32 to vector<2x32xf32>
    %208 = arith.addf %206, %207 : vector<2x32xf32>
    %209 = vector.extract_strided_slice %200 {offsets = [0, 32], sizes = [2, 32], strides = [1, 1]} : vector<2x128xf32> to vector<2x32xf32>
    %cst_77 = arith.constant 5.000000e-01 : f32
    %210 = vector.broadcast %cst_77 : f32 to vector<2x32xf32>
    %211 = arith.mulf %210, %209 : vector<2x32xf32>
    %212 = math.tanh %211 : vector<2x32xf32>
    %cst_78 = arith.constant 5.000000e-01 : f32
    %213 = vector.broadcast %cst_78 : f32 to vector<2x32xf32>
    %214 = arith.mulf %213, %212 : vector<2x32xf32>
    %cst_79 = arith.constant 5.000000e-01 : f32
    %215 = vector.broadcast %cst_79 : f32 to vector<2x32xf32>
    %216 = arith.addf %214, %215 : vector<2x32xf32>
    %217 = vector.extract_strided_slice %200 {offsets = [0, 64], sizes = [2, 32], strides = [1, 1]} : vector<2x128xf32> to vector<2x32xf32>
    %218 = math.tanh %217 : vector<2x32xf32>
    %219 = vector.extract_strided_slice %200 {offsets = [0, 96], sizes = [2, 32], strides = [1, 1]} : vector<2x128xf32> to vector<2x32xf32>
    %cst_80 = arith.constant 5.000000e-01 : f32
    %220 = vector.broadcast %cst_80 : f32 to vector<2x32xf32>
    %221 = arith.mulf %220, %219 : vector<2x32xf32>
    %222 = math.tanh %221 : vector<2x32xf32>
    %cst_81 = arith.constant 5.000000e-01 : f32
    %223 = vector.broadcast %cst_81 : f32 to vector<2x32xf32>
    %224 = arith.mulf %223, %222 : vector<2x32xf32>
    %cst_82 = arith.constant 5.000000e-01 : f32
    %225 = vector.broadcast %cst_82 : f32 to vector<2x32xf32>
    %226 = arith.addf %224, %225 : vector<2x32xf32>
    %227 = arith.mulf %216, %154 : vector<2x32xf32>
    %228 = arith.mulf %208, %218 : vector<2x32xf32>
    %229 = arith.addf %227, %228 : vector<2x32xf32>
    %230 = math.tanh %229 : vector<2x32xf32>
    %231 = arith.mulf %226, %230 : vector<2x32xf32>
    %c3_i32 = arith.constant 3 : i32
    %232 = arith.index_cast %c3_i32 : i32 to index
    %c0_83 = arith.constant 0 : index
    %c0_84 = arith.constant 0 : index
    %233 = vector.load %arg0[%232, %c0_83, %c0_84] : memref<8x2x16xf32, #tpu.memory_space<vmem>>, vector<1x2x16xf32>
    %234 = vector.shape_cast %233 : vector<1x2x16xf32> to vector<2x16xf32>
    %cst_85 = arith.constant dense<0.000000e+00> : vector<2x128xf32>
    %235 = tpu.matmul %234, %0, %cst_85 {dimension_numbers = #tpu.dot_dimension_numbers<[1], [0], [0], [1], [0, 0, 1, 1], [], []>} : vector<2x16xf32>, vector<16x128xf32>, vector<2x128xf32> -> vector<2x128xf32>
    %cst_86 = arith.constant dense<0.000000e+00> : vector<2x128xf32>
    %236 = tpu.matmul %195, %2, %cst_86 {dimension_numbers = #tpu.dot_dimension_numbers<[1], [0], [0], [1], [0, 0, 1, 1], [], []>} : vector<2x32xf32>, vector<32x128xf32>, vector<2x128xf32> -> vector<2x128xf32>
    %237 = arith.addf %235, %236 : vector<2x128xf32>
    %238 = vector.broadcast %4 : vector<1x128xf32> to vector<2x128xf32>
    %239 = arith.addf %237, %238 : vector<2x128xf32>
    %240 = vector.extract_strided_slice %239 {offsets = [0, 0], sizes = [2, 32], strides = [1, 1]} : vector<2x128xf32> to vector<2x32xf32>
    %cst_87 = arith.constant 5.000000e-01 : f32
    %241 = vector.broadcast %cst_87 : f32 to vector<2x32xf32>
    %242 = arith.mulf %241, %240 : vector<2x32xf32>
    %243 = math.tanh %242 : vector<2x32xf32>
    %cst_88 = arith.constant 5.000000e-01 : f32
    %244 = vector.broadcast %cst_88 : f32 to vector<2x32xf32>
    %245 = arith.mulf %244, %243 : vector<2x32xf32>
    %cst_89 = arith.constant 5.000000e-01 : f32
    %246 = vector.broadcast %cst_89 : f32 to vector<2x32xf32>
    %247 = arith.addf %245, %246 : vector<2x32xf32>
    %248 = vector.extract_strided_slice %239 {offsets = [0, 32], sizes = [2, 32], strides = [1, 1]} : vector<2x128xf32> to vector<2x32xf32>
    %cst_90 = arith.constant 5.000000e-01 : f32
    %249 = vector.broadcast %cst_90 : f32 to vector<2x32xf32>
    %250 = arith.mulf %249, %248 : vector<2x32xf32>
    %251 = math.tanh %250 : vector<2x32xf32>
    %cst_91 = arith.constant 5.000000e-01 : f32
    %252 = vector.broadcast %cst_91 : f32 to vector<2x32xf32>
    %253 = arith.mulf %252, %251 : vector<2x32xf32>
    %cst_92 = arith.constant 5.000000e-01 : f32
    %254 = vector.broadcast %cst_92 : f32 to vector<2x32xf32>
    %255 = arith.addf %253, %254 : vector<2x32xf32>
    %256 = vector.extract_strided_slice %239 {offsets = [0, 64], sizes = [2, 32], strides = [1, 1]} : vector<2x128xf32> to vector<2x32xf32>
    %257 = math.tanh %256 : vector<2x32xf32>
    %258 = vector.extract_strided_slice %239 {offsets = [0, 96], sizes = [2, 32], strides = [1, 1]} : vector<2x128xf32> to vector<2x32xf32>
    %cst_93 = arith.constant 5.000000e-01 : f32
    %259 = vector.broadcast %cst_93 : f32 to vector<2x32xf32>
    %260 = arith.mulf %259, %258 : vector<2x32xf32>
    %261 = math.tanh %260 : vector<2x32xf32>
    %cst_94 = arith.constant 5.000000e-01 : f32
    %262 = vector.broadcast %cst_94 : f32 to vector<2x32xf32>
    %263 = arith.mulf %262, %261 : vector<2x32xf32>
    %cst_95 = arith.constant 5.000000e-01 : f32
    %264 = vector.broadcast %cst_95 : f32 to vector<2x32xf32>
    %265 = arith.addf %263, %264 : vector<2x32xf32>
    %266 = arith.mulf %255, %193 : vector<2x32xf32>
    %267 = arith.mulf %247, %257 : vector<2x32xf32>
    %268 = arith.addf %266, %267 : vector<2x32xf32>
    %269 = math.tanh %268 : vector<2x32xf32>
    %270 = arith.mulf %265, %269 : vector<2x32xf32>
    %cst_96 = arith.constant dense<0.000000e+00> : vector<2x128xf32>
    %271 = tpu.matmul %270, %1, %cst_96 {dimension_numbers = #tpu.dot_dimension_numbers<[1], [0], [0], [1], [0, 0, 1, 1], [], []>} : vector<2x32xf32>, vector<32x128xf32>, vector<2x128xf32> -> vector<2x128xf32>
    %cst_97 = arith.constant dense<0.000000e+00> : vector<2x128xf32>
    %272 = tpu.matmul %231, %3, %cst_97 {dimension_numbers = #tpu.dot_dimension_numbers<[1], [0], [0], [1], [0, 0, 1, 1], [], []>} : vector<2x32xf32>, vector<32x128xf32>, vector<2x128xf32> -> vector<2x128xf32>
    %273 = arith.addf %271, %272 : vector<2x128xf32>
    %274 = vector.broadcast %5 : vector<1x128xf32> to vector<2x128xf32>
    %275 = arith.addf %273, %274 : vector<2x128xf32>
    %276 = vector.extract_strided_slice %275 {offsets = [0, 0], sizes = [2, 32], strides = [1, 1]} : vector<2x128xf32> to vector<2x32xf32>
    %cst_98 = arith.constant 5.000000e-01 : f32
    %277 = vector.broadcast %cst_98 : f32 to vector<2x32xf32>
    %278 = arith.mulf %277, %276 : vector<2x32xf32>
    %279 = math.tanh %278 : vector<2x32xf32>
    %cst_99 = arith.constant 5.000000e-01 : f32
    %280 = vector.broadcast %cst_99 : f32 to vector<2x32xf32>
    %281 = arith.mulf %280, %279 : vector<2x32xf32>
    %cst_100 = arith.constant 5.000000e-01 : f32
    %282 = vector.broadcast %cst_100 : f32 to vector<2x32xf32>
    %283 = arith.addf %281, %282 : vector<2x32xf32>
    %284 = vector.extract_strided_slice %275 {offsets = [0, 32], sizes = [2, 32], strides = [1, 1]} : vector<2x128xf32> to vector<2x32xf32>
    %cst_101 = arith.constant 5.000000e-01 : f32
    %285 = vector.broadcast %cst_101 : f32 to vector<2x32xf32>
    %286 = arith.mulf %285, %284 : vector<2x32xf32>
    %287 = math.tanh %286 : vector<2x32xf32>
    %cst_102 = arith.constant 5.000000e-01 : f32
    %288 = vector.broadcast %cst_102 : f32 to vector<2x32xf32>
    %289 = arith.mulf %288, %287 : vector<2x32xf32>
    %cst_103 = arith.constant 5.000000e-01 : f32
    %290 = vector.broadcast %cst_103 : f32 to vector<2x32xf32>
    %291 = arith.addf %289, %290 : vector<2x32xf32>
    %292 = vector.extract_strided_slice %275 {offsets = [0, 64], sizes = [2, 32], strides = [1, 1]} : vector<2x128xf32> to vector<2x32xf32>
    %293 = math.tanh %292 : vector<2x32xf32>
    %294 = vector.extract_strided_slice %275 {offsets = [0, 96], sizes = [2, 32], strides = [1, 1]} : vector<2x128xf32> to vector<2x32xf32>
    %cst_104 = arith.constant 5.000000e-01 : f32
    %295 = vector.broadcast %cst_104 : f32 to vector<2x32xf32>
    %296 = arith.mulf %295, %294 : vector<2x32xf32>
    %297 = math.tanh %296 : vector<2x32xf32>
    %cst_105 = arith.constant 5.000000e-01 : f32
    %298 = vector.broadcast %cst_105 : f32 to vector<2x32xf32>
    %299 = arith.mulf %298, %297 : vector<2x32xf32>
    %cst_106 = arith.constant 5.000000e-01 : f32
    %300 = vector.broadcast %cst_106 : f32 to vector<2x32xf32>
    %301 = arith.addf %299, %300 : vector<2x32xf32>
    %302 = arith.mulf %291, %229 : vector<2x32xf32>
    %303 = arith.mulf %283, %293 : vector<2x32xf32>
    %304 = arith.addf %302, %303 : vector<2x32xf32>
    %305 = math.tanh %304 : vector<2x32xf32>
    %306 = arith.mulf %301, %305 : vector<2x32xf32>
    %c4_i32 = arith.constant 4 : i32
    %307 = arith.index_cast %c4_i32 : i32 to index
    %c0_107 = arith.constant 0 : index
    %c0_108 = arith.constant 0 : index
    %308 = vector.load %arg0[%307, %c0_107, %c0_108] : memref<8x2x16xf32, #tpu.memory_space<vmem>>, vector<1x2x16xf32>
    %309 = vector.shape_cast %308 : vector<1x2x16xf32> to vector<2x16xf32>
    %cst_109 = arith.constant dense<0.000000e+00> : vector<2x128xf32>
    %310 = tpu.matmul %309, %0, %cst_109 {dimension_numbers = #tpu.dot_dimension_numbers<[1], [0], [0], [1], [0, 0, 1, 1], [], []>} : vector<2x16xf32>, vector<16x128xf32>, vector<2x128xf32> -> vector<2x128xf32>
    %cst_110 = arith.constant dense<0.000000e+00> : vector<2x128xf32>
    %311 = tpu.matmul %270, %2, %cst_110 {dimension_numbers = #tpu.dot_dimension_numbers<[1], [0], [0], [1], [0, 0, 1, 1], [], []>} : vector<2x32xf32>, vector<32x128xf32>, vector<2x128xf32> -> vector<2x128xf32>
    %312 = arith.addf %310, %311 : vector<2x128xf32>
    %313 = vector.broadcast %4 : vector<1x128xf32> to vector<2x128xf32>
    %314 = arith.addf %312, %313 : vector<2x128xf32>
    %315 = vector.extract_strided_slice %314 {offsets = [0, 0], sizes = [2, 32], strides = [1, 1]} : vector<2x128xf32> to vector<2x32xf32>
    %cst_111 = arith.constant 5.000000e-01 : f32
    %316 = vector.broadcast %cst_111 : f32 to vector<2x32xf32>
    %317 = arith.mulf %316, %315 : vector<2x32xf32>
    %318 = math.tanh %317 : vector<2x32xf32>
    %cst_112 = arith.constant 5.000000e-01 : f32
    %319 = vector.broadcast %cst_112 : f32 to vector<2x32xf32>
    %320 = arith.mulf %319, %318 : vector<2x32xf32>
    %cst_113 = arith.constant 5.000000e-01 : f32
    %321 = vector.broadcast %cst_113 : f32 to vector<2x32xf32>
    %322 = arith.addf %320, %321 : vector<2x32xf32>
    %323 = vector.extract_strided_slice %314 {offsets = [0, 32], sizes = [2, 32], strides = [1, 1]} : vector<2x128xf32> to vector<2x32xf32>
    %cst_114 = arith.constant 5.000000e-01 : f32
    %324 = vector.broadcast %cst_114 : f32 to vector<2x32xf32>
    %325 = arith.mulf %324, %323 : vector<2x32xf32>
    %326 = math.tanh %325 : vector<2x32xf32>
    %cst_115 = arith.constant 5.000000e-01 : f32
    %327 = vector.broadcast %cst_115 : f32 to vector<2x32xf32>
    %328 = arith.mulf %327, %326 : vector<2x32xf32>
    %cst_116 = arith.constant 5.000000e-01 : f32
    %329 = vector.broadcast %cst_116 : f32 to vector<2x32xf32>
    %330 = arith.addf %328, %329 : vector<2x32xf32>
    %331 = vector.extract_strided_slice %314 {offsets = [0, 64], sizes = [2, 32], strides = [1, 1]} : vector<2x128xf32> to vector<2x32xf32>
    %332 = math.tanh %331 : vector<2x32xf32>
    %333 = vector.extract_strided_slice %314 {offsets = [0, 96], sizes = [2, 32], strides = [1, 1]} : vector<2x128xf32> to vector<2x32xf32>
    %cst_117 = arith.constant 5.000000e-01 : f32
    %334 = vector.broadcast %cst_117 : f32 to vector<2x32xf32>
    %335 = arith.mulf %334, %333 : vector<2x32xf32>
    %336 = math.tanh %335 : vector<2x32xf32>
    %cst_118 = arith.constant 5.000000e-01 : f32
    %337 = vector.broadcast %cst_118 : f32 to vector<2x32xf32>
    %338 = arith.mulf %337, %336 : vector<2x32xf32>
    %cst_119 = arith.constant 5.000000e-01 : f32
    %339 = vector.broadcast %cst_119 : f32 to vector<2x32xf32>
    %340 = arith.addf %338, %339 : vector<2x32xf32>
    %341 = arith.mulf %330, %268 : vector<2x32xf32>
    %342 = arith.mulf %322, %332 : vector<2x32xf32>
    %343 = arith.addf %341, %342 : vector<2x32xf32>
    %344 = math.tanh %343 : vector<2x32xf32>
    %345 = arith.mulf %340, %344 : vector<2x32xf32>
    %cst_120 = arith.constant dense<0.000000e+00> : vector<2x128xf32>
    %346 = tpu.matmul %345, %1, %cst_120 {dimension_numbers = #tpu.dot_dimension_numbers<[1], [0], [0], [1], [0, 0, 1, 1], [], []>} : vector<2x32xf32>, vector<32x128xf32>, vector<2x128xf32> -> vector<2x128xf32>
    %cst_121 = arith.constant dense<0.000000e+00> : vector<2x128xf32>
    %347 = tpu.matmul %306, %3, %cst_121 {dimension_numbers = #tpu.dot_dimension_numbers<[1], [0], [0], [1], [0, 0, 1, 1], [], []>} : vector<2x32xf32>, vector<32x128xf32>, vector<2x128xf32> -> vector<2x128xf32>
    %348 = arith.addf %346, %347 : vector<2x128xf32>
    %349 = vector.broadcast %5 : vector<1x128xf32> to vector<2x128xf32>
    %350 = arith.addf %348, %349 : vector<2x128xf32>
    %351 = vector.extract_strided_slice %350 {offsets = [0, 0], sizes = [2, 32], strides = [1, 1]} : vector<2x128xf32> to vector<2x32xf32>
    %cst_122 = arith.constant 5.000000e-01 : f32
    %352 = vector.broadcast %cst_122 : f32 to vector<2x32xf32>
    %353 = arith.mulf %352, %351 : vector<2x32xf32>
    %354 = math.tanh %353 : vector<2x32xf32>
    %cst_123 = arith.constant 5.000000e-01 : f32
    %355 = vector.broadcast %cst_123 : f32 to vector<2x32xf32>
    %356 = arith.mulf %355, %354 : vector<2x32xf32>
    %cst_124 = arith.constant 5.000000e-01 : f32
    %357 = vector.broadcast %cst_124 : f32 to vector<2x32xf32>
    %358 = arith.addf %356, %357 : vector<2x32xf32>
    %359 = vector.extract_strided_slice %350 {offsets = [0, 32], sizes = [2, 32], strides = [1, 1]} : vector<2x128xf32> to vector<2x32xf32>
    %cst_125 = arith.constant 5.000000e-01 : f32
    %360 = vector.broadcast %cst_125 : f32 to vector<2x32xf32>
    %361 = arith.mulf %360, %359 : vector<2x32xf32>
    %362 = math.tanh %361 : vector<2x32xf32>
    %cst_126 = arith.constant 5.000000e-01 : f32
    %363 = vector.broadcast %cst_126 : f32 to vector<2x32xf32>
    %364 = arith.mulf %363, %362 : vector<2x32xf32>
    %cst_127 = arith.constant 5.000000e-01 : f32
    %365 = vector.broadcast %cst_127 : f32 to vector<2x32xf32>
    %366 = arith.addf %364, %365 : vector<2x32xf32>
    %367 = vector.extract_strided_slice %350 {offsets = [0, 64], sizes = [2, 32], strides = [1, 1]} : vector<2x128xf32> to vector<2x32xf32>
    %368 = math.tanh %367 : vector<2x32xf32>
    %369 = vector.extract_strided_slice %350 {offsets = [0, 96], sizes = [2, 32], strides = [1, 1]} : vector<2x128xf32> to vector<2x32xf32>
    %cst_128 = arith.constant 5.000000e-01 : f32
    %370 = vector.broadcast %cst_128 : f32 to vector<2x32xf32>
    %371 = arith.mulf %370, %369 : vector<2x32xf32>
    %372 = math.tanh %371 : vector<2x32xf32>
    %cst_129 = arith.constant 5.000000e-01 : f32
    %373 = vector.broadcast %cst_129 : f32 to vector<2x32xf32>
    %374 = arith.mulf %373, %372 : vector<2x32xf32>
    %cst_130 = arith.constant 5.000000e-01 : f32
    %375 = vector.broadcast %cst_130 : f32 to vector<2x32xf32>
    %376 = arith.addf %374, %375 : vector<2x32xf32>
    %377 = arith.mulf %366, %304 : vector<2x32xf32>
    %378 = arith.mulf %358, %368 : vector<2x32xf32>
    %379 = arith.addf %377, %378 : vector<2x32xf32>
    %380 = math.tanh %379 : vector<2x32xf32>
    %381 = arith.mulf %376, %380 : vector<2x32xf32>
    %c5_i32 = arith.constant 5 : i32
    %382 = arith.index_cast %c5_i32 : i32 to index
    %c0_131 = arith.constant 0 : index
    %c0_132 = arith.constant 0 : index
    %383 = vector.load %arg0[%382, %c0_131, %c0_132] : memref<8x2x16xf32, #tpu.memory_space<vmem>>, vector<1x2x16xf32>
    %384 = vector.shape_cast %383 : vector<1x2x16xf32> to vector<2x16xf32>
    %cst_133 = arith.constant dense<0.000000e+00> : vector<2x128xf32>
    %385 = tpu.matmul %384, %0, %cst_133 {dimension_numbers = #tpu.dot_dimension_numbers<[1], [0], [0], [1], [0, 0, 1, 1], [], []>} : vector<2x16xf32>, vector<16x128xf32>, vector<2x128xf32> -> vector<2x128xf32>
    %cst_134 = arith.constant dense<0.000000e+00> : vector<2x128xf32>
    %386 = tpu.matmul %345, %2, %cst_134 {dimension_numbers = #tpu.dot_dimension_numbers<[1], [0], [0], [1], [0, 0, 1, 1], [], []>} : vector<2x32xf32>, vector<32x128xf32>, vector<2x128xf32> -> vector<2x128xf32>
    %387 = arith.addf %385, %386 : vector<2x128xf32>
    %388 = vector.broadcast %4 : vector<1x128xf32> to vector<2x128xf32>
    %389 = arith.addf %387, %388 : vector<2x128xf32>
    %390 = vector.extract_strided_slice %389 {offsets = [0, 0], sizes = [2, 32], strides = [1, 1]} : vector<2x128xf32> to vector<2x32xf32>
    %cst_135 = arith.constant 5.000000e-01 : f32
    %391 = vector.broadcast %cst_135 : f32 to vector<2x32xf32>
    %392 = arith.mulf %391, %390 : vector<2x32xf32>
    %393 = math.tanh %392 : vector<2x32xf32>
    %cst_136 = arith.constant 5.000000e-01 : f32
    %394 = vector.broadcast %cst_136 : f32 to vector<2x32xf32>
    %395 = arith.mulf %394, %393 : vector<2x32xf32>
    %cst_137 = arith.constant 5.000000e-01 : f32
    %396 = vector.broadcast %cst_137 : f32 to vector<2x32xf32>
    %397 = arith.addf %395, %396 : vector<2x32xf32>
    %398 = vector.extract_strided_slice %389 {offsets = [0, 32], sizes = [2, 32], strides = [1, 1]} : vector<2x128xf32> to vector<2x32xf32>
    %cst_138 = arith.constant 5.000000e-01 : f32
    %399 = vector.broadcast %cst_138 : f32 to vector<2x32xf32>
    %400 = arith.mulf %399, %398 : vector<2x32xf32>
    %401 = math.tanh %400 : vector<2x32xf32>
    %cst_139 = arith.constant 5.000000e-01 : f32
    %402 = vector.broadcast %cst_139 : f32 to vector<2x32xf32>
    %403 = arith.mulf %402, %401 : vector<2x32xf32>
    %cst_140 = arith.constant 5.000000e-01 : f32
    %404 = vector.broadcast %cst_140 : f32 to vector<2x32xf32>
    %405 = arith.addf %403, %404 : vector<2x32xf32>
    %406 = vector.extract_strided_slice %389 {offsets = [0, 64], sizes = [2, 32], strides = [1, 1]} : vector<2x128xf32> to vector<2x32xf32>
    %407 = math.tanh %406 : vector<2x32xf32>
    %408 = vector.extract_strided_slice %389 {offsets = [0, 96], sizes = [2, 32], strides = [1, 1]} : vector<2x128xf32> to vector<2x32xf32>
    %cst_141 = arith.constant 5.000000e-01 : f32
    %409 = vector.broadcast %cst_141 : f32 to vector<2x32xf32>
    %410 = arith.mulf %409, %408 : vector<2x32xf32>
    %411 = math.tanh %410 : vector<2x32xf32>
    %cst_142 = arith.constant 5.000000e-01 : f32
    %412 = vector.broadcast %cst_142 : f32 to vector<2x32xf32>
    %413 = arith.mulf %412, %411 : vector<2x32xf32>
    %cst_143 = arith.constant 5.000000e-01 : f32
    %414 = vector.broadcast %cst_143 : f32 to vector<2x32xf32>
    %415 = arith.addf %413, %414 : vector<2x32xf32>
    %416 = arith.mulf %405, %343 : vector<2x32xf32>
    %417 = arith.mulf %397, %407 : vector<2x32xf32>
    %418 = arith.addf %416, %417 : vector<2x32xf32>
    %419 = math.tanh %418 : vector<2x32xf32>
    %420 = arith.mulf %415, %419 : vector<2x32xf32>
    %cst_144 = arith.constant dense<0.000000e+00> : vector<2x128xf32>
    %421 = tpu.matmul %420, %1, %cst_144 {dimension_numbers = #tpu.dot_dimension_numbers<[1], [0], [0], [1], [0, 0, 1, 1], [], []>} : vector<2x32xf32>, vector<32x128xf32>, vector<2x128xf32> -> vector<2x128xf32>
    %cst_145 = arith.constant dense<0.000000e+00> : vector<2x128xf32>
    %422 = tpu.matmul %381, %3, %cst_145 {dimension_numbers = #tpu.dot_dimension_numbers<[1], [0], [0], [1], [0, 0, 1, 1], [], []>} : vector<2x32xf32>, vector<32x128xf32>, vector<2x128xf32> -> vector<2x128xf32>
    %423 = arith.addf %421, %422 : vector<2x128xf32>
    %424 = vector.broadcast %5 : vector<1x128xf32> to vector<2x128xf32>
    %425 = arith.addf %423, %424 : vector<2x128xf32>
    %426 = vector.extract_strided_slice %425 {offsets = [0, 0], sizes = [2, 32], strides = [1, 1]} : vector<2x128xf32> to vector<2x32xf32>
    %cst_146 = arith.constant 5.000000e-01 : f32
    %427 = vector.broadcast %cst_146 : f32 to vector<2x32xf32>
    %428 = arith.mulf %427, %426 : vector<2x32xf32>
    %429 = math.tanh %428 : vector<2x32xf32>
    %cst_147 = arith.constant 5.000000e-01 : f32
    %430 = vector.broadcast %cst_147 : f32 to vector<2x32xf32>
    %431 = arith.mulf %430, %429 : vector<2x32xf32>
    %cst_148 = arith.constant 5.000000e-01 : f32
    %432 = vector.broadcast %cst_148 : f32 to vector<2x32xf32>
    %433 = arith.addf %431, %432 : vector<2x32xf32>
    %434 = vector.extract_strided_slice %425 {offsets = [0, 32], sizes = [2, 32], strides = [1, 1]} : vector<2x128xf32> to vector<2x32xf32>
    %cst_149 = arith.constant 5.000000e-01 : f32
    %435 = vector.broadcast %cst_149 : f32 to vector<2x32xf32>
    %436 = arith.mulf %435, %434 : vector<2x32xf32>
    %437 = math.tanh %436 : vector<2x32xf32>
    %cst_150 = arith.constant 5.000000e-01 : f32
    %438 = vector.broadcast %cst_150 : f32 to vector<2x32xf32>
    %439 = arith.mulf %438, %437 : vector<2x32xf32>
    %cst_151 = arith.constant 5.000000e-01 : f32
    %440 = vector.broadcast %cst_151 : f32 to vector<2x32xf32>
    %441 = arith.addf %439, %440 : vector<2x32xf32>
    %442 = vector.extract_strided_slice %425 {offsets = [0, 64], sizes = [2, 32], strides = [1, 1]} : vector<2x128xf32> to vector<2x32xf32>
    %443 = math.tanh %442 : vector<2x32xf32>
    %444 = vector.extract_strided_slice %425 {offsets = [0, 96], sizes = [2, 32], strides = [1, 1]} : vector<2x128xf32> to vector<2x32xf32>
    %cst_152 = arith.constant 5.000000e-01 : f32
    %445 = vector.broadcast %cst_152 : f32 to vector<2x32xf32>
    %446 = arith.mulf %445, %444 : vector<2x32xf32>
    %447 = math.tanh %446 : vector<2x32xf32>
    %cst_153 = arith.constant 5.000000e-01 : f32
    %448 = vector.broadcast %cst_153 : f32 to vector<2x32xf32>
    %449 = arith.mulf %448, %447 : vector<2x32xf32>
    %cst_154 = arith.constant 5.000000e-01 : f32
    %450 = vector.broadcast %cst_154 : f32 to vector<2x32xf32>
    %451 = arith.addf %449, %450 : vector<2x32xf32>
    %452 = arith.mulf %441, %379 : vector<2x32xf32>
    %453 = arith.mulf %433, %443 : vector<2x32xf32>
    %454 = arith.addf %452, %453 : vector<2x32xf32>
    %455 = math.tanh %454 : vector<2x32xf32>
    %456 = arith.mulf %451, %455 : vector<2x32xf32>
    %c6_i32 = arith.constant 6 : i32
    %457 = arith.index_cast %c6_i32 : i32 to index
    %c0_155 = arith.constant 0 : index
    %c0_156 = arith.constant 0 : index
    %458 = vector.load %arg0[%457, %c0_155, %c0_156] : memref<8x2x16xf32, #tpu.memory_space<vmem>>, vector<1x2x16xf32>
    %459 = vector.shape_cast %458 : vector<1x2x16xf32> to vector<2x16xf32>
    %cst_157 = arith.constant dense<0.000000e+00> : vector<2x128xf32>
    %460 = tpu.matmul %459, %0, %cst_157 {dimension_numbers = #tpu.dot_dimension_numbers<[1], [0], [0], [1], [0, 0, 1, 1], [], []>} : vector<2x16xf32>, vector<16x128xf32>, vector<2x128xf32> -> vector<2x128xf32>
    %cst_158 = arith.constant dense<0.000000e+00> : vector<2x128xf32>
    %461 = tpu.matmul %420, %2, %cst_158 {dimension_numbers = #tpu.dot_dimension_numbers<[1], [0], [0], [1], [0, 0, 1, 1], [], []>} : vector<2x32xf32>, vector<32x128xf32>, vector<2x128xf32> -> vector<2x128xf32>
    %462 = arith.addf %460, %461 : vector<2x128xf32>
    %463 = vector.broadcast %4 : vector<1x128xf32> to vector<2x128xf32>
    %464 = arith.addf %462, %463 : vector<2x128xf32>
    %465 = vector.extract_strided_slice %464 {offsets = [0, 0], sizes = [2, 32], strides = [1, 1]} : vector<2x128xf32> to vector<2x32xf32>
    %cst_159 = arith.constant 5.000000e-01 : f32
    %466 = vector.broadcast %cst_159 : f32 to vector<2x32xf32>
    %467 = arith.mulf %466, %465 : vector<2x32xf32>
    %468 = math.tanh %467 : vector<2x32xf32>
    %cst_160 = arith.constant 5.000000e-01 : f32
    %469 = vector.broadcast %cst_160 : f32 to vector<2x32xf32>
    %470 = arith.mulf %469, %468 : vector<2x32xf32>
    %cst_161 = arith.constant 5.000000e-01 : f32
    %471 = vector.broadcast %cst_161 : f32 to vector<2x32xf32>
    %472 = arith.addf %470, %471 : vector<2x32xf32>
    %473 = vector.extract_strided_slice %464 {offsets = [0, 32], sizes = [2, 32], strides = [1, 1]} : vector<2x128xf32> to vector<2x32xf32>
    %cst_162 = arith.constant 5.000000e-01 : f32
    %474 = vector.broadcast %cst_162 : f32 to vector<2x32xf32>
    %475 = arith.mulf %474, %473 : vector<2x32xf32>
    %476 = math.tanh %475 : vector<2x32xf32>
    %cst_163 = arith.constant 5.000000e-01 : f32
    %477 = vector.broadcast %cst_163 : f32 to vector<2x32xf32>
    %478 = arith.mulf %477, %476 : vector<2x32xf32>
    %cst_164 = arith.constant 5.000000e-01 : f32
    %479 = vector.broadcast %cst_164 : f32 to vector<2x32xf32>
    %480 = arith.addf %478, %479 : vector<2x32xf32>
    %481 = vector.extract_strided_slice %464 {offsets = [0, 64], sizes = [2, 32], strides = [1, 1]} : vector<2x128xf32> to vector<2x32xf32>
    %482 = math.tanh %481 : vector<2x32xf32>
    %483 = vector.extract_strided_slice %464 {offsets = [0, 96], sizes = [2, 32], strides = [1, 1]} : vector<2x128xf32> to vector<2x32xf32>
    %cst_165 = arith.constant 5.000000e-01 : f32
    %484 = vector.broadcast %cst_165 : f32 to vector<2x32xf32>
    %485 = arith.mulf %484, %483 : vector<2x32xf32>
    %486 = math.tanh %485 : vector<2x32xf32>
    %cst_166 = arith.constant 5.000000e-01 : f32
    %487 = vector.broadcast %cst_166 : f32 to vector<2x32xf32>
    %488 = arith.mulf %487, %486 : vector<2x32xf32>
    %cst_167 = arith.constant 5.000000e-01 : f32
    %489 = vector.broadcast %cst_167 : f32 to vector<2x32xf32>
    %490 = arith.addf %488, %489 : vector<2x32xf32>
    %491 = arith.mulf %480, %418 : vector<2x32xf32>
    %492 = arith.mulf %472, %482 : vector<2x32xf32>
    %493 = arith.addf %491, %492 : vector<2x32xf32>
    %494 = math.tanh %493 : vector<2x32xf32>
    %495 = arith.mulf %490, %494 : vector<2x32xf32>
    %cst_168 = arith.constant dense<0.000000e+00> : vector<2x128xf32>
    %496 = tpu.matmul %495, %1, %cst_168 {dimension_numbers = #tpu.dot_dimension_numbers<[1], [0], [0], [1], [0, 0, 1, 1], [], []>} : vector<2x32xf32>, vector<32x128xf32>, vector<2x128xf32> -> vector<2x128xf32>
    %cst_169 = arith.constant dense<0.000000e+00> : vector<2x128xf32>
    %497 = tpu.matmul %456, %3, %cst_169 {dimension_numbers = #tpu.dot_dimension_numbers<[1], [0], [0], [1], [0, 0, 1, 1], [], []>} : vector<2x32xf32>, vector<32x128xf32>, vector<2x128xf32> -> vector<2x128xf32>
    %498 = arith.addf %496, %497 : vector<2x128xf32>
    %499 = vector.broadcast %5 : vector<1x128xf32> to vector<2x128xf32>
    %500 = arith.addf %498, %499 : vector<2x128xf32>
    %501 = vector.extract_strided_slice %500 {offsets = [0, 0], sizes = [2, 32], strides = [1, 1]} : vector<2x128xf32> to vector<2x32xf32>
    %cst_170 = arith.constant 5.000000e-01 : f32
    %502 = vector.broadcast %cst_170 : f32 to vector<2x32xf32>
    %503 = arith.mulf %502, %501 : vector<2x32xf32>
    %504 = math.tanh %503 : vector<2x32xf32>
    %cst_171 = arith.constant 5.000000e-01 : f32
    %505 = vector.broadcast %cst_171 : f32 to vector<2x32xf32>
    %506 = arith.mulf %505, %504 : vector<2x32xf32>
    %cst_172 = arith.constant 5.000000e-01 : f32
    %507 = vector.broadcast %cst_172 : f32 to vector<2x32xf32>
    %508 = arith.addf %506, %507 : vector<2x32xf32>
    %509 = vector.extract_strided_slice %500 {offsets = [0, 32], sizes = [2, 32], strides = [1, 1]} : vector<2x128xf32> to vector<2x32xf32>
    %cst_173 = arith.constant 5.000000e-01 : f32
    %510 = vector.broadcast %cst_173 : f32 to vector<2x32xf32>
    %511 = arith.mulf %510, %509 : vector<2x32xf32>
    %512 = math.tanh %511 : vector<2x32xf32>
    %cst_174 = arith.constant 5.000000e-01 : f32
    %513 = vector.broadcast %cst_174 : f32 to vector<2x32xf32>
    %514 = arith.mulf %513, %512 : vector<2x32xf32>
    %cst_175 = arith.constant 5.000000e-01 : f32
    %515 = vector.broadcast %cst_175 : f32 to vector<2x32xf32>
    %516 = arith.addf %514, %515 : vector<2x32xf32>
    %517 = vector.extract_strided_slice %500 {offsets = [0, 64], sizes = [2, 32], strides = [1, 1]} : vector<2x128xf32> to vector<2x32xf32>
    %518 = math.tanh %517 : vector<2x32xf32>
    %519 = vector.extract_strided_slice %500 {offsets = [0, 96], sizes = [2, 32], strides = [1, 1]} : vector<2x128xf32> to vector<2x32xf32>
    %cst_176 = arith.constant 5.000000e-01 : f32
    %520 = vector.broadcast %cst_176 : f32 to vector<2x32xf32>
    %521 = arith.mulf %520, %519 : vector<2x32xf32>
    %522 = math.tanh %521 : vector<2x32xf32>
    %cst_177 = arith.constant 5.000000e-01 : f32
    %523 = vector.broadcast %cst_177 : f32 to vector<2x32xf32>
    %524 = arith.mulf %523, %522 : vector<2x32xf32>
    %cst_178 = arith.constant 5.000000e-01 : f32
    %525 = vector.broadcast %cst_178 : f32 to vector<2x32xf32>
    %526 = arith.addf %524, %525 : vector<2x32xf32>
    %527 = arith.mulf %516, %454 : vector<2x32xf32>
    %528 = arith.mulf %508, %518 : vector<2x32xf32>
    %529 = arith.addf %527, %528 : vector<2x32xf32>
    %530 = math.tanh %529 : vector<2x32xf32>
    %531 = arith.mulf %526, %530 : vector<2x32xf32>
    %c7_i32 = arith.constant 7 : i32
    %532 = arith.index_cast %c7_i32 : i32 to index
    %c0_179 = arith.constant 0 : index
    %c0_180 = arith.constant 0 : index
    %533 = vector.load %arg0[%532, %c0_179, %c0_180] : memref<8x2x16xf32, #tpu.memory_space<vmem>>, vector<1x2x16xf32>
    %534 = vector.shape_cast %533 : vector<1x2x16xf32> to vector<2x16xf32>
    %cst_181 = arith.constant dense<0.000000e+00> : vector<2x128xf32>
    %535 = tpu.matmul %534, %0, %cst_181 {dimension_numbers = #tpu.dot_dimension_numbers<[1], [0], [0], [1], [0, 0, 1, 1], [], []>} : vector<2x16xf32>, vector<16x128xf32>, vector<2x128xf32> -> vector<2x128xf32>
    %cst_182 = arith.constant dense<0.000000e+00> : vector<2x128xf32>
    %536 = tpu.matmul %495, %2, %cst_182 {dimension_numbers = #tpu.dot_dimension_numbers<[1], [0], [0], [1], [0, 0, 1, 1], [], []>} : vector<2x32xf32>, vector<32x128xf32>, vector<2x128xf32> -> vector<2x128xf32>
    %537 = arith.addf %535, %536 : vector<2x128xf32>
    %538 = vector.broadcast %4 : vector<1x128xf32> to vector<2x128xf32>
    %539 = arith.addf %537, %538 : vector<2x128xf32>
    %540 = vector.extract_strided_slice %539 {offsets = [0, 0], sizes = [2, 32], strides = [1, 1]} : vector<2x128xf32> to vector<2x32xf32>
    %cst_183 = arith.constant 5.000000e-01 : f32
    %541 = vector.broadcast %cst_183 : f32 to vector<2x32xf32>
    %542 = arith.mulf %541, %540 : vector<2x32xf32>
    %543 = math.tanh %542 : vector<2x32xf32>
    %cst_184 = arith.constant 5.000000e-01 : f32
    %544 = vector.broadcast %cst_184 : f32 to vector<2x32xf32>
    %545 = arith.mulf %544, %543 : vector<2x32xf32>
    %cst_185 = arith.constant 5.000000e-01 : f32
    %546 = vector.broadcast %cst_185 : f32 to vector<2x32xf32>
    %547 = arith.addf %545, %546 : vector<2x32xf32>
    %548 = vector.extract_strided_slice %539 {offsets = [0, 32], sizes = [2, 32], strides = [1, 1]} : vector<2x128xf32> to vector<2x32xf32>
    %cst_186 = arith.constant 5.000000e-01 : f32
    %549 = vector.broadcast %cst_186 : f32 to vector<2x32xf32>
    %550 = arith.mulf %549, %548 : vector<2x32xf32>
    %551 = math.tanh %550 : vector<2x32xf32>
    %cst_187 = arith.constant 5.000000e-01 : f32
    %552 = vector.broadcast %cst_187 : f32 to vector<2x32xf32>
    %553 = arith.mulf %552, %551 : vector<2x32xf32>
    %cst_188 = arith.constant 5.000000e-01 : f32
    %554 = vector.broadcast %cst_188 : f32 to vector<2x32xf32>
    %555 = arith.addf %553, %554 : vector<2x32xf32>
    %556 = vector.extract_strided_slice %539 {offsets = [0, 64], sizes = [2, 32], strides = [1, 1]} : vector<2x128xf32> to vector<2x32xf32>
    %557 = math.tanh %556 : vector<2x32xf32>
    %558 = vector.extract_strided_slice %539 {offsets = [0, 96], sizes = [2, 32], strides = [1, 1]} : vector<2x128xf32> to vector<2x32xf32>
    %cst_189 = arith.constant 5.000000e-01 : f32
    %559 = vector.broadcast %cst_189 : f32 to vector<2x32xf32>
    %560 = arith.mulf %559, %558 : vector<2x32xf32>
    %561 = math.tanh %560 : vector<2x32xf32>
    %cst_190 = arith.constant 5.000000e-01 : f32
    %562 = vector.broadcast %cst_190 : f32 to vector<2x32xf32>
    %563 = arith.mulf %562, %561 : vector<2x32xf32>
    %cst_191 = arith.constant 5.000000e-01 : f32
    %564 = vector.broadcast %cst_191 : f32 to vector<2x32xf32>
    %565 = arith.addf %563, %564 : vector<2x32xf32>
    %566 = arith.mulf %555, %493 : vector<2x32xf32>
    %567 = arith.mulf %547, %557 : vector<2x32xf32>
    %568 = arith.addf %566, %567 : vector<2x32xf32>
    %569 = math.tanh %568 : vector<2x32xf32>
    %570 = arith.mulf %565, %569 : vector<2x32xf32>
    %cst_192 = arith.constant dense<0.000000e+00> : vector<2x128xf32>
    %571 = tpu.matmul %570, %1, %cst_192 {dimension_numbers = #tpu.dot_dimension_numbers<[1], [0], [0], [1], [0, 0, 1, 1], [], []>} : vector<2x32xf32>, vector<32x128xf32>, vector<2x128xf32> -> vector<2x128xf32>
    %cst_193 = arith.constant dense<0.000000e+00> : vector<2x128xf32>
    %572 = tpu.matmul %531, %3, %cst_193 {dimension_numbers = #tpu.dot_dimension_numbers<[1], [0], [0], [1], [0, 0, 1, 1], [], []>} : vector<2x32xf32>, vector<32x128xf32>, vector<2x128xf32> -> vector<2x128xf32>
    %573 = arith.addf %571, %572 : vector<2x128xf32>
    %574 = vector.broadcast %5 : vector<1x128xf32> to vector<2x128xf32>
    %575 = arith.addf %573, %574 : vector<2x128xf32>
    %576 = vector.extract_strided_slice %575 {offsets = [0, 0], sizes = [2, 32], strides = [1, 1]} : vector<2x128xf32> to vector<2x32xf32>
    %cst_194 = arith.constant 5.000000e-01 : f32
    %577 = vector.broadcast %cst_194 : f32 to vector<2x32xf32>
    %578 = arith.mulf %577, %576 : vector<2x32xf32>
    %579 = math.tanh %578 : vector<2x32xf32>
    %cst_195 = arith.constant 5.000000e-01 : f32
    %580 = vector.broadcast %cst_195 : f32 to vector<2x32xf32>
    %581 = arith.mulf %580, %579 : vector<2x32xf32>
    %cst_196 = arith.constant 5.000000e-01 : f32
    %582 = vector.broadcast %cst_196 : f32 to vector<2x32xf32>
    %583 = arith.addf %581, %582 : vector<2x32xf32>
    %584 = vector.extract_strided_slice %575 {offsets = [0, 32], sizes = [2, 32], strides = [1, 1]} : vector<2x128xf32> to vector<2x32xf32>
    %cst_197 = arith.constant 5.000000e-01 : f32
    %585 = vector.broadcast %cst_197 : f32 to vector<2x32xf32>
    %586 = arith.mulf %585, %584 : vector<2x32xf32>
    %587 = math.tanh %586 : vector<2x32xf32>
    %cst_198 = arith.constant 5.000000e-01 : f32
    %588 = vector.broadcast %cst_198 : f32 to vector<2x32xf32>
    %589 = arith.mulf %588, %587 : vector<2x32xf32>
    %cst_199 = arith.constant 5.000000e-01 : f32
    %590 = vector.broadcast %cst_199 : f32 to vector<2x32xf32>
    %591 = arith.addf %589, %590 : vector<2x32xf32>
    %592 = vector.extract_strided_slice %575 {offsets = [0, 64], sizes = [2, 32], strides = [1, 1]} : vector<2x128xf32> to vector<2x32xf32>
    %593 = math.tanh %592 : vector<2x32xf32>
    %594 = vector.extract_strided_slice %575 {offsets = [0, 96], sizes = [2, 32], strides = [1, 1]} : vector<2x128xf32> to vector<2x32xf32>
    %cst_200 = arith.constant 5.000000e-01 : f32
    %595 = vector.broadcast %cst_200 : f32 to vector<2x32xf32>
    %596 = arith.mulf %595, %594 : vector<2x32xf32>
    %597 = math.tanh %596 : vector<2x32xf32>
    %cst_201 = arith.constant 5.000000e-01 : f32
    %598 = vector.broadcast %cst_201 : f32 to vector<2x32xf32>
    %599 = arith.mulf %598, %597 : vector<2x32xf32>
    %cst_202 = arith.constant 5.000000e-01 : f32
    %600 = vector.broadcast %cst_202 : f32 to vector<2x32xf32>
    %601 = arith.addf %599, %600 : vector<2x32xf32>
    %602 = arith.mulf %591, %529 : vector<2x32xf32>
    %603 = arith.mulf %583, %593 : vector<2x32xf32>
    %604 = arith.addf %602, %603 : vector<2x32xf32>
    %605 = math.tanh %604 : vector<2x32xf32>
    %606 = arith.mulf %601, %605 : vector<2x32xf32>
    %c8_i32 = arith.constant 8 : i32
    %c0_203 = arith.constant 0 : index
    %c0_204 = arith.constant 0 : index
    %607 = vector.load %arg7[%c0_203, %c0_204] : memref<32x128xf32, #tpu.memory_space<vmem>>, vector<32x128xf32>
    %cst_205 = arith.constant dense<0.000000e+00> : vector<2x128xf32>
    %608 = tpu.matmul %606, %607, %cst_205 {dimension_numbers = #tpu.dot_dimension_numbers<[1], [0], [0], [1], [0, 0, 1, 1], [], []>} : vector<2x32xf32>, vector<32x128xf32>, vector<2x128xf32> -> vector<2x128xf32>
    %c0_206 = arith.constant 0 : index
    %c0_207 = arith.constant 0 : index
    %609 = vector.load %arg8[%c0_206, %c0_207] : memref<1x128xf32, #tpu.memory_space<vmem>>, vector<1x128xf32>
    %610 = vector.broadcast %609 : vector<1x128xf32> to vector<2x128xf32>
    %611 = arith.addf %608, %610 : vector<2x128xf32>
    %c0_208 = arith.constant 0 : index
    %c0_209 = arith.constant 0 : index
    %612 = vector.load %arg9[%c0_208, %c0_209] : memref<2x128xf32, #tpu.memory_space<vmem>>, vector<2x128xf32>
    tpu.vector_store %arg9[%c0_208, %c0_209], %611 {strides = array<i32>} : memref<2x128xf32, #tpu.memory_space<vmem>>, vector<2x128xf32>,
    return
  }
}

</mosaic_0001>

<bundles_post_ra>
// kernel: tpu_custom_call.1
= control target key start
LH: loop header
LB: loop body
LE: loop exit
PB: predicated region body
PF: predicated region fallthrough
CT: control target
= control target key end

     0   :  { %14 = vsyncpa [#allocation3], 0  ;;  %s4482_s0 = inlined_call_operand.hbm [shape: f32[8,2,16], index: 0, kind: input, shape index: {}]   ;;  %s4483_s1 = inlined_call_operand.hbm [shape: f32[16,128], index: 1, kind: input, shape index: {}]   ;;  %s4484_s2 = inlined_call_operand.hbm [shape: f32[32,128], index: 2, kind: input, shape index: {}]   ;;  %s4485_s3 = inlined_call_operand.vmem [shape: f32[1,128], index: 3, kind: input, shape index: {}]   ;;  %s4486_s4 = inlined_call_operand.hbm [shape: f32[32,128], index: 4, kind: input, shape index: {}]   ;;  %s4487_s5 = inlined_call_operand.hbm [shape: f32[32,128], index: 5, kind: input, shape index: {}]   ;;  %s4488_s6 = inlined_call_operand.vmem [shape: f32[1,128], index: 6, kind: input, shape index: {}]   ;;  %s4489_s7 = inlined_call_operand.hbm [shape: f32[32,128], index: 7, kind: input, shape index: {}]   ;;  %s4490_s8 = inlined_call_operand.vmem [shape: f32[1,128], index: 8, kind: input, shape index: {}]   ;;  %s4491_s9 = inlined_call_operand.hbm [shape: f32[2,128], index: 9, kind: output, shape index: {}]  }
   0x1   :  { %15 = vsyncpa [#allocation6], 0 }
   0x2   :  { %16 = vsyncpa [#allocation9], 0 }
   0x3   :  { %17 = vsyncpa [#allocation12], 0 }
   0x4   :  { %18 = vsyncpa [#allocation4], 0  ;;  %s3940_s30 = smov [#allocation5]   ;;  %s3776_s13 = scalar_lea.hbm %s4483_s1, 256 }
   0x5   :  { %s36_s10 = sshll.u32 %s3940_s30, 4  ;;  %p3777_p0 = scmp.ne.s32.totalorder %s4483_s1, %s3776_s13  ;;  %s37_s10 = int_to_ptr.vmem [resolvable:$true] %s36_s10 }
   0x6   :  { %p3780_p1 = scmp.lt.u32.totalorder %s3776_s13, %s4483_s1 }
   0x8   :  { %p3782_p2 = pnand %p3780_p1, %p3777_p0 }
   0xa   :  { %3785 = shalt.err (!%p3782_p2)
}
   0xb   :  { %s3786_s18 = scalar_lea.vmem %s37_s10, 256  ;;  %p3791_p4 = scmp.lt.s32.totalorder %s37_s10, %s37_s10 }
   0xc   :  { %p3787_p3 = scmp.ne.s32.totalorder %s37_s10, %s3786_s18  ;;  %p3792_p5 = scmp.lt.s32.totalorder %s3786_s18, %s3786_s18 }
   0xe   :  { %p3793_p6 = por %p3792_p5, %p3791_p4 }
  0x10   :  { %p3794_p7 = pnand %p3793_p6, %p3787_p3 }
  0x12   :  { %3797 = shalt.err (!%p3794_p7)
}
  0x13   :  { %s3941_s19 = smov 128   ;;  %s3942_s20 = smov 8  }
  0x14   :  { %42 = dma.hbm_to_vmem [thread:$0]  %s4483_s1, 256, %s37_s10, [#allocation6], %s3941_s19, %s3941_s19, %s3942_s20  }
  0x15   :  { %s3943_s23 = smov [#allocation8]   ;;  %s3944_s25 = smov [#allocation2]  }
  0x16   :  { %s62_s24 = sshll.u32 %s3943_s23, 4  ;;  %s24_s26 = sshll.u32 %s3944_s25, 4  ;;  %s63_s24 = int_to_ptr.vmem [resolvable:$true] %s62_s24  ;;  %s25_s26 = int_to_ptr.vmem [resolvable:$true] %s24_s26 }
  0x17   :  { %s3798_s29 = scalar_lea.hbm %s4486_s4, 512 }
  0x18   :  { %p3799_p8 = scmp.ne.s32.totalorder %s4486_s4, %s3798_s29  ;;  %p3802_p9 = scmp.lt.u32.totalorder %s3798_s29, %s4486_s4 }
  0x1a   :  { %p3804_p10 = pnand %p3802_p9, %p3799_p8 }
  0x1c   :  { %3807 = shalt.err (!%p3804_p10)
}
  0x1d   :  { %s3808_s1 = scalar_lea.vmem %s63_s24, 512  ;;  %p3813_p12 = scmp.lt.s32.totalorder %s63_s24, %s63_s24 }
  0x1e   :  { %p3809_p11 = scmp.ne.s32.totalorder %s63_s24, %s3808_s1  ;;  %p3814_p13 = scmp.lt.s32.totalorder %s3808_s1, %s3808_s1 }
  0x20   :  { %p3815_p0 = por %p3814_p13, %p3813_p12 }
  0x22   :  { %p3816_p1 = pnand %p3815_p0, %p3809_p11 }
  0x24   :  { %3819 = shalt.err (!%p3816_p1)
}
  0x25   :  { %68 = dma.hbm_to_vmem [thread:$0]  %s4486_s4, 512, %s63_s24, [#allocation9], %s3941_s19, %s3941_s19, %s3942_s20  }
  0x26   :  { %s3820_s17 = scalar_lea.hbm %s4482_s0, 256 }
  0x27   :  { %p3821_p2 = scmp.ne.s32.totalorder %s4482_s0, %s3820_s17  ;;  %p3824_p3 = scmp.lt.u32.totalorder %s3820_s17, %s4482_s0 }
  0x29   :  { %p3826_p4 = pnand %p3824_p3, %p3821_p2 }
  0x2b   :  { %3829 = shalt.err (!%p3826_p4)
}
  0x2c   :  { %s3830_s25 = scalar_lea.vmem %s25_s26, 256  ;;  %p3835_p6 = scmp.lt.s32.totalorder %s25_s26, %s25_s26 }
  0x2d   :  { %p3831_p5 = scmp.ne.s32.totalorder %s25_s26, %s3830_s25  ;;  %p3836_p7 = scmp.lt.s32.totalorder %s3830_s25, %s3830_s25 }
  0x2f   :  { %p3837_p8 = por %p3836_p7, %p3835_p6 }
  0x31   :  { %p3838_p9 = pnand %p3837_p8, %p3831_p5 }
  0x33   :  { %3841 = shalt.err (!%p3838_p9)
}
  0x34   :  { %s3945_s4 = smov 32   ;;  %s3946_s24 = smov 2  }
  0x35   :  { %30 = dma.hbm_to_vmem [thread:$0]  %s4482_s0, 256, %s25_s26, [#allocation3], %s3945_s4, %s3945_s4, %s3946_s24  }
  0x36   :  { %s3947_s29 = smov [#allocation7]   ;;  %s3948_s11 = smov [#allocation10]  }
  0x37   :  { %s48_s30 = sshll.u32 %s3947_s29, 4  ;;  %s74_s12 = sshll.u32 %s3948_s11, 4  ;;  %s49_s30 = int_to_ptr.vmem [resolvable:$true] %s48_s30  ;;  %s75_s12 = int_to_ptr.vmem [resolvable:$true] %s74_s12 }
  0x38   :  { %s3842_s10 = scalar_lea.hbm %s4484_s2, 512 }
  0x39   :  { %p3843_p10 = scmp.ne.s32.totalorder %s4484_s2, %s3842_s10  ;;  %p3846_p11 = scmp.lt.u32.totalorder %s3842_s10, %s4484_s2 }
  0x3b   :  { %p3848_p12 = pnand %p3846_p11, %p3843_p10 }
  0x3d   :  { %3851 = shalt.err (!%p3848_p12)
}
  0x3e   :  { %s3852_s0 = scalar_lea.vmem %s49_s30, 512  ;;  %p3857_p0 = scmp.lt.s32.totalorder %s49_s30, %s49_s30 }
  0x3f   :  { %p3853_p13 = scmp.ne.s32.totalorder %s49_s30, %s3852_s0  ;;  %p3858_p1 = scmp.lt.s32.totalorder %s3852_s0, %s3852_s0 }
  0x41   :  { %p3859_p2 = por %p3858_p1, %p3857_p0 }
  0x43   :  { %p3860_p3 = pnand %p3859_p2, %p3853_p13 }
  0x45   :  { %3863 = shalt.err (!%p3860_p3)
}
  0x46   :  { %54 = dma.hbm_to_vmem [thread:$0]  %s4484_s2, 512, %s49_s30, [#allocation6], %s3941_s19, %s3941_s19, %s3942_s20  }
  0x47   :  { %s3864_s23 = scalar_lea.hbm %s4487_s5, 512 }
  0x48   :  { %p3865_p4 = scmp.ne.s32.totalorder %s4487_s5, %s3864_s23  ;;  %p3868_p5 = scmp.lt.u32.totalorder %s3864_s23, %s4487_s5 }
  0x4a   :  { %p3870_p6 = pnand %p3868_p5, %p3865_p4 }
  0x4c   :  { %3873 = shalt.err (!%p3870_p6)
}
  0x4d   :  { %s3874_s29 = scalar_lea.vmem %s75_s12, 512  ;;  %p3879_p8 = scmp.lt.s32.totalorder %s75_s12, %s75_s12 }
  0x4e   :  { %p3875_p7 = scmp.ne.s32.totalorder %s75_s12, %s3874_s29  ;;  %p3880_p9 = scmp.lt.s32.totalorder %s3874_s29, %s3874_s29 }
  0x50   :  { %p3881_p10 = por %p3880_p9, %p3879_p8 }
  0x52   :  { %p3882_p11 = pnand %p3881_p10, %p3875_p7 }
  0x54   :  { %3885 = shalt.err (!%p3882_p11)
}
  0x55   :  { %80 = dma.hbm_to_vmem [thread:$0]  %s4487_s5, 512, %s75_s12, [#allocation9], %s3941_s19, %s3941_s19, %s3942_s20  }
  0x56   :  { %s3949_s11 = smov [#allocation11]   ;;  %s3886_s14 = scalar_lea.hbm %s4489_s7, 512 }
  0x57   :  { %s88_s13 = sshll.u32 %s3949_s11, 4  ;;  %p3887_p12 = scmp.ne.s32.totalorder %s4489_s7, %s3886_s14  ;;  %s89_s13 = int_to_ptr.vmem [resolvable:$true] %s88_s13 }
  0x58   :  { %p3890_p13 = scmp.lt.u32.totalorder %s3886_s14, %s4489_s7 }
  0x5a   :  { %p3892_p0 = pnand %p3890_p13, %p3887_p12 }
  0x5c   :  { %3895 = shalt.err (!%p3892_p0)
}
  0x5d   :  { %s3896_s26 = scalar_lea.vmem %s89_s13, 512  ;;  %p3901_p2 = scmp.lt.s32.totalorder %s89_s13, %s89_s13 }
  0x5e   :  { %p3897_p1 = scmp.ne.s32.totalorder %s89_s13, %s3896_s26  ;;  %p3902_p3 = scmp.lt.s32.totalorder %s3896_s26, %s3896_s26 }
  0x60   :  { %p3903_p4 = por %p3902_p3, %p3901_p2 }
  0x62   :  { %p3904_p5 = pnand %p3903_p4, %p3897_p1 }
  0x64   :  { %3907 = shalt.err (!%p3904_p5)
}
  0x65   :  { %94 = dma.hbm_to_vmem [thread:$0]  %s4489_s7, 512, %s89_s13, [#allocation12], %s3941_s19, %s3941_s19, %s3942_s20  }
  0x66   :  { %3930 = dma.done.wait [#allocation3], 256  }
  0x67   :  { %3931 = vsyncadd [#allocation3], 4294967040 }
  0x68   :  { %3932 = dma.done.wait [#allocation6], 768  }
  0x69   :  { %3933 = vsyncadd [#allocation6], 4294966528 }
  0x6a   :  { %3934 = dma.done.wait [#allocation9], 1024  }
  0x6b   :  { %3935 = vsyncadd [#allocation9], 4294966272 }
  0x6c   :  { %3936 = dma.done.wait [#allocation12], 512  }
  0x6d   :  { %3937 = vsyncadd [#allocation12], 4294966784  ;;  %v3950_v0 = vmov 0.0|0.0   ;;  %vm3951_vm0 = vmmov 0   ;;  %v3952_v1 = vmov 0.0   ;;  %v121_v2 = vld [vmem:[#allocation7] sm:$0xff] }
  0x6e   :  { %3489 = vmatprep.subr.bf16.mxu0 %v3950_v0  ;;  %3495 = vmatprep.subr.bf16.mxu1 %v3950_v0  ;;  %v122_v3 = vld [vmem:[#allocation7 + $0x8] sm:$0xff]  ;;  %v115_v4 = vld [vmem:[#allocation5] sm:$0xff]  ;;  %v116_v6 = vld [vmem:[#allocation5 + $0x8] sm:$0xff]  ;;  %vm206_vm1 = vcmask 130048   ;;  %s3953_s20 = smov 64   ;;  %vm132_vm2 = vcmask 261120  }
  0x6f   :  { %3173 = vmatprep.mubr.msk.f32.mxu1 %vm3951_vm0, %v3952_v1  ;;  %3166 = vmatprep.mubr.msk.f32.mxu0 %vm3951_vm0, %v3952_v1  ;;  %v4100_v5 = vpack.c.bf16 %v122_v3, %v121_v2  ;;  %v123_v7 = vld [vmem:[#allocation7 + $0x10] sm:$0xff]  ;;  %v124_v8 = vld [vmem:[#allocation7 + $0x18] sm:$0xff]  ;;  %v4102_v9 = vpack.c.bf16 %v116_v6, %v115_v4  ;;  %v131_v11 = vld [vmem:[#allocation2] sm:$0x3]  ;;  %s3954_s27 = smov [#allocation13]  }
  0x70   :  { %v4105_v10 = vpack.c.bf16 %v124_v8, %v123_v7  ;;  %v4121_v14 = vld [vmem:[%s4485_s3] ss:$0 sm:$0xff]  ;;  %v126_v30 = vld [vmem:[#allocation10 + $0x8] sm:$0xff]  ;;  %v127_v31 = vld [vmem:[#allocation10 + $0x10] sm:$0xff]  ;;  %s2963_s28 = sshll.u32 %s3954_s27, 4  ;;  %s2964_s28 = int_to_ptr.vmem [resolvable:$true] %s2963_s28 }
  0x71   :  { %3491 = vmatpush3.bf16.msra.mxu0 %v4100_v5  ;;  %3497 = vmatpush3.bf16.msra.mxu1 %v4102_v9  ;;  %v125_v29 = vld [vmem:[#allocation10] sm:$0xff]  ;;  %v128_v33 = vld [vmem:[#allocation10 + $0x18] sm:$0xff]  ;;  %v118_v35 = vld [vmem:[#allocation8 + $0x8] sm:$0xff]  ;;  %s3908_s29 = scalar_lea.vmem %s2964_s28, 32  ;;  %p3913_p7 = scmp.lt.s32.totalorder %s2964_s28, %s2964_s28 }
  0x72   :  { %3492 = vmatprep.subr.bf16.mxu0 %v3950_v0  ;;  %3498 = vmatprep.subr.bf16.mxu1 %v3950_v0  ;;  %v4129_v32 = vpack.c.bf16 %v126_v30, %v125_v29  ;;  %v117_v34 = vld [vmem:[#allocation8] sm:$0xff]  ;;  %v119_v37 = vld [vmem:[#allocation8 + $0x10] sm:$0xff]  ;;  %v120_v38 = vld [vmem:[#allocation8 + $0x18] sm:$0xff]  ;;  %v4134_v39 = vpack.c.bf16 %v128_v33, %v127_v31  ;;  %p3909_p6 = scmp.ne.s32.totalorder %s2964_s28, %s3908_s29  ;;  %p3914_p8 = scmp.lt.s32.totalorder %s3908_s29, %s3908_s29 }
  0x73   :  { %v4131_v36 = vpack.c.bf16 %v118_v35, %v117_v34  ;;  %v4138_v40 = vpack.c.bf16 %v120_v38, %v119_v37  ;;  %v484_v47 = vld [vmem:[#allocation2 + $0x2] sm:$0x3]  ;;  %v4176_v48 = vld [vmem:[%s4488_s6] ss:$0 sm:$0xff]  ;;  %v825_v29 = vld [vmem:[#allocation2 + $0x4] sm:$0x3] }
  0x74   :  { %3174 = vmatmul.mubr.msk.f32.vlgmr.msra.gmra.mrb[0].mxu1 %vm206_vm1, %v131_v11  ;;  %p3915_p9 = por %p3914_p8, %p3913_p7 }
  0x75   :  { %3494 = vmatpush3.bf16.msra.mxu0 %v4105_v10  ;;  %3184 = vmatprep.mubr.msk.f32.mxu1 %vm3951_vm0, %v3952_v1 }
  0x76   :  { %3504 = vmatprep.subr.bf16.mxu0 %v3950_v0  ;;  %3500 = vmatpush3.bf16.msra.mxu1 %v4129_v32  ;;  %p3916_p10 = pnand %p3915_p9, %p3909_p6 }
  0x77   :  { %3501 = vmatprep.subr.bf16.mxu1 %v3950_v0 }
  0x78   :  { %3167 = vmatmul.mubr.f32.vlgmr.msra.gmra.mrb[0].mxu0 %v3952_v1 }
  0x79   :  { %3195 = vmatprep.mubr.msk.f32.mxu0 %vm3951_vm0, %v3952_v1  ;;  %3506 = vmatpush3.bf16.msra.mxu0 %v4131_v36 }
  0x7a   :  { %3507 = vmatprep.subr.bf16.mxu0 %v3950_v0  ;;  %3503 = vmatpush3.bf16.msra.mxu1 %v4134_v39 }
  0x7b   :  { %3510 = vmatprep.subr.bf16.mxu1 %v3950_v0 }
  0x7d   :  { %3509 = vmatpush3.bf16.msra.mxu0 %v4138_v40  ;;  %3185 = vmatmul.mubr.f32.vlgmr.msra.gmra.mrb[2].mxu1 %v3952_v1 }
  0x7e   :  { %3519 = vmatprep.subr.bf16.mxu0 %v3950_v0  ;;  %3512 = vmatpush3.bf16.msra.mxu1 %v4100_v5 }
  0x7f   :  { %3513 = vmatprep.subr.bf16.mxu1 %v3950_v0  ;;  %3206 = vmatprep.mubr.msk.f32.mxu1 %vm3951_vm0, %v3952_v1 }
  0x82   :  { %3515 = vmatpush3.bf16.msra.mxu1 %v4105_v10 }
  0x83   :  { %3516 = vmatprep.subr.bf16.mxu1 %v3950_v0 }
 0x147   :  { %v276_v12 = vpop.f32.mrb[0].mxu1 }
 0x148   :  { %v3175_v13 = vpop.f32.mrb[1].mxu1 }
 0x14b   :  { %v202_v15 = vpop.f32.mrb[0].mxu0 }
 0x14c   :  { %v277_v16 = vadd.f32 %v276_v12, %v202_v15  ;;  %v3168_v17 = vpop.f32.mrb[1].mxu0 }
 0x14e   :  { %v286_v18 = vadd.f32 %v4121_v14, %v277_v16 }
 0x150   :  { %3678 = vtanh.f32 %v286_v18  ;;  %v287_v20 = vmul.f32 0.5, %v286_v18  ;;  %v375_v44 = vpop.f32.mrb[2].mxu1 }
 0x151   :  { %v3186_v45 = vpop.f32.mrb[3].mxu1 }
 0x152   :  { %3680 = vtanh.f32 %v287_v20 }
 0x15a   :  { %v3679_v19 = vpop.eup %3678 }
 0x15b   :  { %294 = vrot.lane.b32.xlu0 %v3679_v19, %s3953_s20 }
 0x15c   :  { %v3681_v21 = vpop.eup %3680 }
 0x15d   :  { %v289_v22 = vmul.f32 0.5, %v3681_v21 }
 0x15f   :  { %v290_v23 = vadd.f32 0.5, %v289_v22 }
 0x161   :  { %v292_v26 = vmul.f32 0.0, %v290_v23 }
 0x1cd   :  { %v295_v24 = vpop.permute.xlu0 %294 }
 0x1ce   :  { %v297_v25 = vmul.f32 %v295_v24, %v290_v23 }
 0x1d0   :  { %299 = vrot.lane.b32.xlu0 %v297_v25, %s3945_s4 }
 0x242   :  { %v300_v27 = vpop.permute.xlu0 %299 }
 0x243   :  { %v4126_v28 = vadd.f32 %v300_v27, %v292_v26 }
 0x245   :  { %3682 = vtanh.f32 %v4126_v28 }
 0x24f   :  { %v3683_v41 = vpop.eup %3682 }
 0x250   :  { %305 = vrot.lane.b32.xlu1 %v3683_v41, %s3953_s20 }
 0x2c2   :  { %v306_v42 = vpop.permute.xlu1 %305 }
 0x2c3   :  { %v308_v43 = vmul.f32 %v306_v42, %v290_v23 }
 0x2c5   :  { %380 = vrot.lane.b32.xlu1 %v308_v43, %s3945_s4 }
 0x337   :  { %v381_v46 = vpop.permute.xlu1 %380 }
 0x338   :  { %3196 = vmatmul.mubr.msk.f32.vlgmr.msra.gmra.mrb[2].mxu0 %vm132_vm2, %v381_v46  ;;  %3207 = vmatmul.mubr.msk.f32.vlgmr.msra.gmra.mrb[4].mxu1 %vm132_vm2, %v381_v46 }
 0x339   :  { %3518 = vmatpush3.bf16.msra.mxu1 %v4102_v9  ;;  %3213 = vmatprep.mubr.msk.f32.mxu1 %vm3951_vm0, %v3952_v1 }
 0x33a   :  { %3521 = vmatpush3.bf16.msra.mxu0 %v4129_v32  ;;  %3525 = vmatprep.subr.bf16.mxu1 %v3950_v0 }
 0x33b   :  { %3522 = vmatprep.subr.bf16.mxu0 %v3950_v0  ;;  %3224 = vmatprep.mubr.msk.f32.mxu0 %vm3951_vm0, %v3952_v1 }
 0x33c   :  { %3214 = vmatmul.mubr.msk.f32.vlgmr.msra.gmra.mrb[6].mxu1 %vm206_vm1, %v484_v47 }
 0x33d   :  { %3527 = vmatpush3.bf16.msra.mxu1 %v4131_v36  ;;  %3235 = vmatprep.mubr.msk.f32.mxu1 %vm3951_vm0, %v3952_v1 }
 0x33e   :  { %3524 = vmatpush3.bf16.msra.mxu0 %v4134_v39  ;;  %3528 = vmatprep.subr.bf16.mxu1 %v3950_v0 }
 0x33f   :  { %3531 = vmatprep.subr.bf16.mxu0 %v3950_v0 }
 0x341   :  { %3530 = vmatpush3.bf16.msra.mxu1 %v4138_v40 }
 0x342   :  { %3537 = vmatprep.subr.bf16.mxu1 %v3950_v0 }
 0x40b   :  { %v450_v49 = vpop.f32.mrb[2].mxu0  ;;  %v551_v50 = vpop.f32.mrb[4].mxu1 }
 0x40c   :  { %v451_v51 = vadd.f32 %v450_v49, %v375_v44  ;;  %v3197_v52 = vpop.f32.mrb[3].mxu0  ;;  %v3208_v53 = vpop.f32.mrb[5].mxu1 }
 0x40e   :  { %v460_v54 = vadd.f32 %v4176_v48, %v451_v51 }
 0x40f   :  { %v624_v55 = vpop.f32.mrb[6].mxu1 }
 0x410   :  { %3684 = vtanh.f32 %v460_v54  ;;  %v625_v56 = vadd.f32 %v624_v55, %v551_v50  ;;  %v3215_v57 = vpop.f32.mrb[7].mxu1  ;;  %v461_v61 = vmul.f32 0.5, %v460_v54 }
 0x412   :  { %v628_v58 = vadd.f32 %v4121_v14, %v625_v56 }
 0x414   :  { %3686 = vtanh.f32 %v628_v58  ;;  %v629_v62 = vmul.f32 0.5, %v628_v58 }
 0x415   :  { %3688 = vtanh.f32 %v461_v61 }
 0x416   :  { %3690 = vtanh.f32 %v629_v62 }
 0x41a   :  { %v3685_v59 = vpop.eup %3684 }
 0x41b   :  { %468 = vrot.lane.b32.xlu0 %v3685_v59, %s3953_s20 }
 0x41e   :  { %v3687_v60 = vpop.eup %3686 }
 0x41f   :  { %636 = vrot.lane.b32.xlu1 %v3687_v60, %s3953_s20  ;;  %v3689_v63 = vpop.eup %3688 }
 0x420   :  { %v463_v2 = vmul.f32 0.5, %v3689_v63  ;;  %v3691_v3 = vpop.eup %3690 }
 0x421   :  { %v631_v6 = vmul.f32 0.5, %v3691_v3 }
 0x422   :  { %v464_v4 = vadd.f32 0.5, %v463_v2 }
 0x423   :  { %v632_v11 = vadd.f32 0.5, %v631_v6 }
 0x424   :  { %v466_v15 = vmul.f32 0.0, %v464_v4 }
 0x425   :  { %v634_v18 = vmul.f32 %v632_v11, %v4126_v28 }
 0x48d   :  { %v469_v7 = vpop.permute.xlu0 %468 }
 0x48e   :  { %v471_v8 = vmul.f32 %v469_v7, %v464_v4 }
 0x490   :  { %473 = vrot.lane.b32.xlu0 %v471_v8, %s3945_s4 }
 0x491   :  { %v637_v12 = vpop.permute.xlu1 %636 }
 0x492   :  { %v639_v13 = vmul.f32 %v637_v12, %v632_v11 }
 0x494   :  { %641 = vrot.lane.b32.xlu1 %v639_v13, %s3945_s4 }
 0x502   :  { %v474_v16 = vpop.permute.xlu0 %473 }
 0x503   :  { %v4184_v17 = vadd.f32 %v474_v16, %v466_v15 }
 0x505   :  { %3692 = vtanh.f32 %v4184_v17 }
 0x506   :  { %v642_v19 = vpop.permute.xlu1 %641 }
 0x507   :  { %v4188_v20 = vadd.f32 %v642_v19, %v634_v18 }
 0x509   :  { %3694 = vtanh.f32 %v4188_v20 }
 0x50f   :  { %v3693_v21 = vpop.eup %3692 }
 0x510   :  { %479 = vrot.lane.b32.xlu0 %v3693_v21, %s3953_s20 }
 0x513   :  { %v3695_v22 = vpop.eup %3694 }
 0x514   :  { %647 = vrot.lane.b32.xlu1 %v3695_v22, %s3953_s20 }
 0x582   :  { %v480_v23 = vpop.permute.xlu0 %479 }
 0x583   :  { %v482_v24 = vmul.f32 %v480_v23, %v464_v4 }
 0x585   :  { %652 = vrot.lane.b32.xlu0 %v482_v24, %s3945_s4 }
 0x586   :  { %v648_v25 = vpop.permute.xlu1 %647 }
 0x587   :  { %v650_v26 = vmul.f32 %v648_v25, %v632_v11 }
 0x589   :  { %727 = vrot.lane.b32.xlu1 %v650_v26, %s3945_s4 }
 0x5f7   :  { %v653_v27 = vpop.permute.xlu0 %652 }
 0x5f8   :  { %3225 = vmatmul.mubr.msk.f32.vlgmr.msra.gmra.mrb[4].mxu0 %vm132_vm2, %v653_v27 }
 0x5f9   :  { %3533 = vmatpush3.bf16.msra.mxu0 %v4100_v5  ;;  %3246 = vmatprep.mubr.msk.f32.mxu0 %vm3951_vm0, %v3952_v1 }
 0x5fa   :  { %3534 = vmatprep.subr.bf16.mxu0 %v3950_v0 }
 0x5fb   :  { %v728_v28 = vpop.permute.xlu1 %727 }
 0x5fc   :  { %3236 = vmatmul.mubr.msk.f32.vlgmr.msra.gmra.mrb[8].mxu1 %vm132_vm2, %v728_v28 }
 0x5fd   :  { %3536 = vmatpush3.bf16.msra.mxu0 %v4105_v10  ;;  %3539 = vmatpush3.bf16.msra.mxu1 %v4102_v9 }
 0x5fe   :  { %3253 = vmatprep.mubr.msk.f32.mxu1 %vm3951_vm0, %v3952_v1  ;;  %3540 = vmatprep.subr.bf16.mxu1 %v3950_v0 }
 0x5ff   :  { %3546 = vmatprep.subr.bf16.mxu0 %v3950_v0 }
 0x600   :  { %3247 = vmatmul.mubr.msk.f32.vlgmr.msra.gmra.mrb[6].mxu0 %vm132_vm2, %v728_v28  ;;  %3254 = vmatmul.mubr.msk.f32.vlgmr.msra.gmra.mrb[10].mxu1 %vm206_vm1, %v825_v29 }
 0x601   :  { %3542 = vmatpush3.bf16.msra.mxu1 %v4129_v32  ;;  %3548 = vmatpush3.bf16.msra.mxu0 %v4131_v36 }
 0x602   :  { %3543 = vmatprep.subr.bf16.mxu1 %v3950_v0  ;;  %3264 = vmatprep.mubr.msk.f32.mxu1 %vm3951_vm0, %v3952_v1 }
 0x603   :  { %3549 = vmatprep.subr.bf16.mxu0 %v3950_v0  ;;  %3275 = vmatprep.mubr.msk.f32.mxu0 %vm3951_vm0, %v3952_v1 }
 0x605   :  { %3545 = vmatpush3.bf16.msra.mxu1 %v4134_v39  ;;  %3551 = vmatpush3.bf16.msra.mxu0 %v4138_v40 }
 0x606   :  { %3552 = vmatprep.subr.bf16.mxu1 %v3950_v0  ;;  %3558 = vmatprep.subr.bf16.mxu0 %v3950_v0 }
 0x6cb   :  { %v722_v30 = vpop.f32.mrb[4].mxu0 }
 0x6cc   :  { %v3226_v31 = vpop.f32.mrb[5].mxu0 }
 0x6cf   :  { %v797_v33 = vpop.f32.mrb[8].mxu1 }
 0x6d0   :  { %v798_v34 = vadd.f32 %v797_v33, %v722_v30  ;;  %v3237_v35 = vpop.f32.mrb[9].mxu1 }
 0x6d2   :  { %v801_v37 = vadd.f32 %v4176_v48, %v798_v34 }
 0x6d3   :  { %v892_v38 = vpop.f32.mrb[6].mxu0  ;;  %v965_v41 = vpop.f32.mrb[10].mxu1 }
 0x6d4   :  { %3696 = vtanh.f32 %v801_v37  ;;  %v3248_v42 = vpop.f32.mrb[7].mxu0  ;;  %v966_v43 = vadd.f32 %v965_v41, %v892_v38  ;;  %v3255_v44 = vpop.f32.mrb[11].mxu1  ;;  %v802_v49 = vmul.f32 0.5, %v801_v37 }
 0x6d6   :  { %v969_v45 = vadd.f32 %v4121_v14, %v966_v43 }
 0x6d8   :  { %3698 = vtanh.f32 %v969_v45  ;;  %v970_v50 = vmul.f32 0.5, %v969_v45 }
 0x6d9   :  { %3700 = vtanh.f32 %v802_v49 }
 0x6da   :  { %3702 = vtanh.f32 %v970_v50 }
 0x6de   :  { %v3697_v46 = vpop.eup %3696 }
 0x6df   :  { %809 = vrot.lane.b32.xlu0 %v3697_v46, %s3953_s20 }
 0x6e2   :  { %v3699_v47 = vpop.eup %3698 }
 0x6e3   :  { %977 = vrot.lane.b32.xlu1 %v3699_v47, %s3953_s20  ;;  %v3701_v51 = vpop.eup %3700 }
 0x6e4   :  { %v804_v52 = vmul.f32 0.5, %v3701_v51  ;;  %v3703_v53 = vpop.eup %3702 }
 0x6e5   :  { %v972_v55 = vmul.f32 0.5, %v3703_v53 }
 0x6e6   :  { %v805_v54 = vadd.f32 0.5, %v804_v52 }
 0x6e7   :  { %v973_v58 = vadd.f32 0.5, %v972_v55 }
 0x6e8   :  { %v807_v61 = vmul.f32 %v805_v54, %v4184_v17  ;;  %v1166_v17 = vld [vmem:[#allocation2 + $0x6] sm:$0x3] }
 0x6e9   :  { %v975_v2 = vmul.f32 %v973_v58, %v4188_v20 }
 0x751   :  { %v810_v56 = vpop.permute.xlu0 %809 }
 0x752   :  { %v812_v57 = vmul.f32 %v810_v56, %v805_v54 }
 0x754   :  { %814 = vrot.lane.b32.xlu0 %v812_v57, %s3945_s4 }
 0x755   :  { %v978_v59 = vpop.permute.xlu1 %977 }
 0x756   :  { %v980_v60 = vmul.f32 %v978_v59, %v973_v58 }
 0x758   :  { %982 = vrot.lane.b32.xlu1 %v980_v60, %s3945_s4 }
 0x7c6   :  { %v815_v62 = vpop.permute.xlu0 %814 }
 0x7c7   :  { %v4228_v63 = vadd.f32 %v815_v62, %v807_v61 }
 0x7c9   :  { %3704 = vtanh.f32 %v4228_v63 }
 0x7ca   :  { %v983_v3 = vpop.permute.xlu1 %982 }
 0x7cb   :  { %v4232_v4 = vadd.f32 %v983_v3, %v975_v2 }
 0x7cd   :  { %3706 = vtanh.f32 %v4232_v4 }
 0x7d3   :  { %v3705_v6 = vpop.eup %3704 }
 0x7d4   :  { %820 = vrot.lane.b32.xlu0 %v3705_v6, %s3953_s20 }
 0x7d7   :  { %v3707_v7 = vpop.eup %3706 }
 0x7d8   :  { %988 = vrot.lane.b32.xlu1 %v3707_v7, %s3953_s20 }
 0x846   :  { %v821_v8 = vpop.permute.xlu0 %820 }
 0x847   :  { %v823_v11 = vmul.f32 %v821_v8, %v805_v54 }
 0x849   :  { %993 = vrot.lane.b32.xlu0 %v823_v11, %s3945_s4 }
 0x84a   :  { %v989_v12 = vpop.permute.xlu1 %988 }
 0x84b   :  { %v991_v13 = vmul.f32 %v989_v12, %v973_v58 }
 0x84d   :  { %1068 = vrot.lane.b32.xlu1 %v991_v13, %s3945_s4 }
 0x8bb   :  { %v994_v15 = vpop.permute.xlu0 %993 }
 0x8bc   :  { %3265 = vmatmul.mubr.msk.f32.vlgmr.msra.gmra.mrb[12].mxu1 %vm132_vm2, %v994_v15 }
 0x8bd   :  { %3554 = vmatpush3.bf16.msra.mxu1 %v4100_v5  ;;  %3286 = vmatprep.mubr.msk.f32.mxu1 %vm3951_vm0, %v3952_v1 }
 0x8be   :  { %3555 = vmatprep.subr.bf16.mxu1 %v3950_v0 }
 0x8bf   :  { %v1069_v16 = vpop.permute.xlu1 %1068 }
 0x8c0   :  { %3276 = vmatmul.mubr.msk.f32.vlgmr.msra.gmra.mrb[8].mxu0 %vm132_vm2, %v1069_v16 }
 0x8c1   :  { %3557 = vmatpush3.bf16.msra.mxu1 %v4105_v10  ;;  %3560 = vmatpush3.bf16.msra.mxu0 %v4102_v9 }
 0x8c2   :  { %3293 = vmatprep.mubr.msk.f32.mxu0 %vm3951_vm0, %v3952_v1  ;;  %3561 = vmatprep.subr.bf16.mxu0 %v3950_v0 }
 0x8c3   :  { %3567 = vmatprep.subr.bf16.mxu1 %v3950_v0 }
 0x8c4   :  { %3287 = vmatmul.mubr.msk.f32.vlgmr.msra.gmra.mrb[14].mxu1 %vm132_vm2, %v1069_v16  ;;  %3294 = vmatmul.mubr.msk.f32.vlgmr.msra.gmra.mrb[10].mxu0 %vm206_vm1, %v1166_v17 }
 0x8c5   :  { %3563 = vmatpush3.bf16.msra.mxu0 %v4129_v32  ;;  %3569 = vmatpush3.bf16.msra.mxu1 %v4131_v36 }
 0x8c6   :  { %3564 = vmatprep.subr.bf16.mxu0 %v3950_v0  ;;  %3304 = vmatprep.mubr.msk.f32.mxu0 %vm3951_vm0, %v3952_v1 }
 0x8c7   :  { %3570 = vmatprep.subr.bf16.mxu1 %v3950_v0  ;;  %3315 = vmatprep.mubr.msk.f32.mxu1 %vm3951_vm0, %v3952_v1 }
 0x8c9   :  { %3566 = vmatpush3.bf16.msra.mxu0 %v4134_v39  ;;  %3572 = vmatpush3.bf16.msra.mxu1 %v4138_v40 }
 0x8ca   :  { %3573 = vmatprep.subr.bf16.mxu0 %v3950_v0  ;;  %3579 = vmatprep.subr.bf16.mxu1 %v3950_v0 }
 0x98f   :  { %v1063_v18 = vpop.f32.mrb[12].mxu1 }
 0x990   :  { %v3266_v19 = vpop.f32.mrb[13].mxu1 }
 0x993   :  { %v1138_v20 = vpop.f32.mrb[8].mxu0 }
 0x994   :  { %v1139_v21 = vadd.f32 %v1138_v20, %v1063_v18  ;;  %v3277_v22 = vpop.f32.mrb[9].mxu0 }
 0x996   :  { %v1142_v23 = vadd.f32 %v4176_v48, %v1139_v21 }
 0x997   :  { %v1233_v24 = vpop.f32.mrb[14].mxu1  ;;  %v1306_v25 = vpop.f32.mrb[10].mxu0 }
 0x998   :  { %3708 = vtanh.f32 %v1142_v23  ;;  %v3288_v26 = vpop.f32.mrb[15].mxu1  ;;  %v1307_v27 = vadd.f32 %v1306_v25, %v1233_v24  ;;  %v3295_v28 = vpop.f32.mrb[11].mxu0  ;;  %v1143_v33 = vmul.f32 0.5, %v1142_v23 }
 0x99a   :  { %v1310_v29 = vadd.f32 %v4121_v14, %v1307_v27 }
 0x99c   :  { %3710 = vtanh.f32 %v1310_v29  ;;  %v1311_v34 = vmul.f32 0.5, %v1310_v29 }
 0x99d   :  { %3712 = vtanh.f32 %v1143_v33 }
 0x99e   :  { %3714 = vtanh.f32 %v1311_v34 }
 0x9a2   :  { %v3709_v30 = vpop.eup %3708 }
 0x9a3   :  { %1150 = vrot.lane.b32.xlu0 %v3709_v30, %s3953_s20 }
 0x9a6   :  { %v3711_v31 = vpop.eup %3710 }
 0x9a7   :  { %1318 = vrot.lane.b32.xlu1 %v3711_v31, %s3953_s20  ;;  %v3713_v35 = vpop.eup %3712 }
 0x9a8   :  { %v1145_v37 = vmul.f32 0.5, %v3713_v35  ;;  %v3715_v38 = vpop.eup %3714 }
 0x9a9   :  { %v1313_v42 = vmul.f32 0.5, %v3715_v38 }
 0x9aa   :  { %v1146_v41 = vadd.f32 0.5, %v1145_v37 }
 0x9ab   :  { %v1314_v45 = vadd.f32 0.5, %v1313_v42 }
 0x9ac   :  { %v1148_v49 = vmul.f32 %v1146_v41, %v4228_v63  ;;  %v1507_v63 = vld [vmem:[#allocation2 + $0x8] sm:$0x3] }
 0x9ad   :  { %v1316_v52 = vmul.f32 %v1314_v45, %v4232_v4 }
 0xa15   :  { %v1151_v43 = vpop.permute.xlu0 %1150 }
 0xa16   :  { %v1153_v44 = vmul.f32 %v1151_v43, %v1146_v41 }
 0xa18   :  { %1155 = vrot.lane.b32.xlu0 %v1153_v44, %s3945_s4 }
 0xa19   :  { %v1319_v46 = vpop.permute.xlu1 %1318 }
 0xa1a   :  { %v1321_v47 = vmul.f32 %v1319_v46, %v1314_v45 }
 0xa1c   :  { %1323 = vrot.lane.b32.xlu1 %v1321_v47, %s3945_s4 }
 0xa8a   :  { %v1156_v50 = vpop.permute.xlu0 %1155 }
 0xa8b   :  { %v4272_v51 = vadd.f32 %v1156_v50, %v1148_v49 }
 0xa8d   :  { %3716 = vtanh.f32 %v4272_v51 }
 0xa8e   :  { %v1324_v53 = vpop.permute.xlu1 %1323 }
 0xa8f   :  { %v4276_v54 = vadd.f32 %v1324_v53, %v1316_v52 }
 0xa91   :  { %3718 = vtanh.f32 %v4276_v54 }
 0xa97   :  { %v3717_v55 = vpop.eup %3716 }
 0xa98   :  { %1161 = vrot.lane.b32.xlu0 %v3717_v55, %s3953_s20 }
 0xa9b   :  { %v3719_v56 = vpop.eup %3718 }
 0xa9c   :  { %1329 = vrot.lane.b32.xlu1 %v3719_v56, %s3953_s20 }
 0xb0a   :  { %v1162_v57 = vpop.permute.xlu0 %1161 }
 0xb0b   :  { %v1164_v58 = vmul.f32 %v1162_v57, %v1146_v41 }
 0xb0d   :  { %1334 = vrot.lane.b32.xlu0 %v1164_v58, %s3945_s4 }
 0xb0e   :  { %v1330_v59 = vpop.permute.xlu1 %1329 }
 0xb0f   :  { %v1332_v60 = vmul.f32 %v1330_v59, %v1314_v45 }
 0xb11   :  { %1409 = vrot.lane.b32.xlu1 %v1332_v60, %s3945_s4 }
 0xb7f   :  { %v1335_v61 = vpop.permute.xlu0 %1334 }
 0xb80   :  { %3305 = vmatmul.mubr.msk.f32.vlgmr.msra.gmra.mrb[12].mxu0 %vm132_vm2, %v1335_v61 }
 0xb81   :  { %3575 = vmatpush3.bf16.msra.mxu0 %v4100_v5  ;;  %3326 = vmatprep.mubr.msk.f32.mxu0 %vm3951_vm0, %v3952_v1 }
 0xb82   :  { %3576 = vmatprep.subr.bf16.mxu0 %v3950_v0 }
 0xb83   :  { %v1410_v62 = vpop.permute.xlu1 %1409 }
 0xb84   :  { %3316 = vmatmul.mubr.msk.f32.vlgmr.msra.gmra.mrb[16].mxu1 %vm132_vm2, %v1410_v62 }
 0xb85   :  { %3578 = vmatpush3.bf16.msra.mxu0 %v4105_v10  ;;  %3581 = vmatpush3.bf16.msra.mxu1 %v4102_v9 }
 0xb86   :  { %3333 = vmatprep.mubr.msk.f32.mxu1 %vm3951_vm0, %v3952_v1  ;;  %3582 = vmatprep.subr.bf16.mxu1 %v3950_v0 }
 0xb87   :  { %3588 = vmatprep.subr.bf16.mxu0 %v3950_v0 }
 0xb88   :  { %3327 = vmatmul.mubr.msk.f32.vlgmr.msra.gmra.mrb[14].mxu0 %vm132_vm2, %v1410_v62  ;;  %3334 = vmatmul.mubr.msk.f32.vlgmr.msra.gmra.mrb[18].mxu1 %vm206_vm1, %v1507_v63 }
 0xb89   :  { %3584 = vmatpush3.bf16.msra.mxu1 %v4129_v32  ;;  %3590 = vmatpush3.bf16.msra.mxu0 %v4131_v36 }
 0xb8a   :  { %3585 = vmatprep.subr.bf16.mxu1 %v3950_v0  ;;  %3344 = vmatprep.mubr.msk.f32.mxu1 %vm3951_vm0, %v3952_v1 }
 0xb8b   :  { %3591 = vmatprep.subr.bf16.mxu0 %v3950_v0  ;;  %3355 = vmatprep.mubr.msk.f32.mxu0 %vm3951_vm0, %v3952_v1 }
 0xb8d   :  { %3587 = vmatpush3.bf16.msra.mxu1 %v4134_v39  ;;  %3593 = vmatpush3.bf16.msra.mxu0 %v4138_v40 }
 0xb8e   :  { %3594 = vmatprep.subr.bf16.mxu1 %v3950_v0  ;;  %3600 = vmatprep.subr.bf16.mxu0 %v3950_v0 }
 0xc53   :  { %v1404_v2 = vpop.f32.mrb[12].mxu0 }
 0xc54   :  { %v3306_v3 = vpop.f32.mrb[13].mxu0 }
 0xc57   :  { %v1479_v4 = vpop.f32.mrb[16].mxu1 }
 0xc58   :  { %v1480_v6 = vadd.f32 %v1479_v4, %v1404_v2  ;;  %v3317_v7 = vpop.f32.mrb[17].mxu1 }
 0xc5a   :  { %v1483_v8 = vadd.f32 %v4176_v48, %v1480_v6 }
 0xc5b   :  { %v1574_v11 = vpop.f32.mrb[14].mxu0  ;;  %v1647_v12 = vpop.f32.mrb[18].mxu1 }
 0xc5c   :  { %3720 = vtanh.f32 %v1483_v8  ;;  %v3328_v13 = vpop.f32.mrb[15].mxu0  ;;  %v1648_v15 = vadd.f32 %v1647_v12, %v1574_v11  ;;  %v3335_v16 = vpop.f32.mrb[19].mxu1  ;;  %v1484_v20 = vmul.f32 0.5, %v1483_v8 }
 0xc5e   :  { %v1651_v17 = vadd.f32 %v4121_v14, %v1648_v15 }
 0xc60   :  { %3722 = vtanh.f32 %v1651_v17  ;;  %v1652_v21 = vmul.f32 0.5, %v1651_v17 }
 0xc61   :  { %3724 = vtanh.f32 %v1484_v20 }
 0xc62   :  { %3726 = vtanh.f32 %v1652_v21 }
 0xc66   :  { %v3721_v18 = vpop.eup %3720 }
 0xc67   :  { %1491 = vrot.lane.b32.xlu0 %v3721_v18, %s3953_s20 }
 0xc6a   :  { %v3723_v19 = vpop.eup %3722 }
 0xc6b   :  { %1659 = vrot.lane.b32.xlu1 %v3723_v19, %s3953_s20  ;;  %v3725_v22 = vpop.eup %3724 }
 0xc6c   :  { %v1486_v23 = vmul.f32 0.5, %v3725_v22  ;;  %v3727_v24 = vpop.eup %3726 }
 0xc6d   :  { %v1654_v26 = vmul.f32 0.5, %v3727_v24 }
 0xc6e   :  { %v1487_v25 = vadd.f32 0.5, %v1486_v23 }
 0xc6f   :  { %v1655_v29 = vadd.f32 0.5, %v1654_v26 }
 0xc70   :  { %v1489_v33 = vmul.f32 %v1487_v25, %v4272_v51  ;;  %v1848_v51 = vld [vmem:[#allocation2 + $0xa] sm:$0x3] }
 0xc71   :  { %v1657_v37 = vmul.f32 %v1655_v29, %v4276_v54 }
 0xcd9   :  { %v1492_v27 = vpop.permute.xlu0 %1491 }
 0xcda   :  { %v1494_v28 = vmul.f32 %v1492_v27, %v1487_v25 }
 0xcdc   :  { %1496 = vrot.lane.b32.xlu0 %v1494_v28, %s3945_s4 }
 0xcdd   :  { %v1660_v30 = vpop.permute.xlu1 %1659 }
 0xcde   :  { %v1662_v31 = vmul.f32 %v1660_v30, %v1655_v29 }
 0xce0   :  { %1664 = vrot.lane.b32.xlu1 %v1662_v31, %s3945_s4 }
 0xd4e   :  { %v1497_v34 = vpop.permute.xlu0 %1496 }
 0xd4f   :  { %v4316_v35 = vadd.f32 %v1497_v34, %v1489_v33 }
 0xd51   :  { %3728 = vtanh.f32 %v4316_v35 }
 0xd52   :  { %v1665_v38 = vpop.permute.xlu1 %1664 }
 0xd53   :  { %v4320_v41 = vadd.f32 %v1665_v38, %v1657_v37 }
 0xd55   :  { %3730 = vtanh.f32 %v4320_v41 }
 0xd5b   :  { %v3729_v42 = vpop.eup %3728 }
 0xd5c   :  { %1502 = vrot.lane.b32.xlu0 %v3729_v42, %s3953_s20 }
 0xd5f   :  { %v3731_v43 = vpop.eup %3730 }
 0xd60   :  { %1670 = vrot.lane.b32.xlu1 %v3731_v43, %s3953_s20 }
 0xdce   :  { %v1503_v44 = vpop.permute.xlu0 %1502 }
 0xdcf   :  { %v1505_v45 = vmul.f32 %v1503_v44, %v1487_v25 }
 0xdd1   :  { %1675 = vrot.lane.b32.xlu0 %v1505_v45, %s3945_s4 }
 0xdd2   :  { %v1671_v46 = vpop.permute.xlu1 %1670 }
 0xdd3   :  { %v1673_v47 = vmul.f32 %v1671_v46, %v1655_v29 }
 0xdd5   :  { %1750 = vrot.lane.b32.xlu1 %v1673_v47, %s3945_s4 }
 0xe43   :  { %v1676_v49 = vpop.permute.xlu0 %1675 }
 0xe44   :  { %3345 = vmatmul.mubr.msk.f32.vlgmr.msra.gmra.mrb[20].mxu1 %vm132_vm2, %v1676_v49 }
 0xe45   :  { %3596 = vmatpush3.bf16.msra.mxu1 %v4100_v5  ;;  %3366 = vmatprep.mubr.msk.f32.mxu1 %vm3951_vm0, %v3952_v1 }
 0xe46   :  { %3597 = vmatprep.subr.bf16.mxu1 %v3950_v0 }
 0xe47   :  { %v1751_v50 = vpop.permute.xlu1 %1750 }
 0xe48   :  { %3356 = vmatmul.mubr.msk.f32.vlgmr.msra.gmra.mrb[16].mxu0 %vm132_vm2, %v1751_v50 }
 0xe49   :  { %3599 = vmatpush3.bf16.msra.mxu1 %v4105_v10  ;;  %3602 = vmatpush3.bf16.msra.mxu0 %v4102_v9 }
 0xe4a   :  { %3373 = vmatprep.mubr.msk.f32.mxu0 %vm3951_vm0, %v3952_v1  ;;  %3603 = vmatprep.subr.bf16.mxu0 %v3950_v0 }
 0xe4b   :  { %3609 = vmatprep.subr.bf16.mxu1 %v3950_v0 }
 0xe4c   :  { %3367 = vmatmul.mubr.msk.f32.vlgmr.msra.gmra.mrb[22].mxu1 %vm132_vm2, %v1751_v50  ;;  %3374 = vmatmul.mubr.msk.f32.vlgmr.msra.gmra.mrb[18].mxu0 %vm206_vm1, %v1848_v51 }
 0xe4d   :  { %3605 = vmatpush3.bf16.msra.mxu0 %v4129_v32  ;;  %3611 = vmatpush3.bf16.msra.mxu1 %v4131_v36 }
 0xe4e   :  { %3606 = vmatprep.subr.bf16.mxu0 %v3950_v0  ;;  %3384 = vmatprep.mubr.msk.f32.mxu0 %vm3951_vm0, %v3952_v1 }
 0xe4f   :  { %3612 = vmatprep.subr.bf16.mxu1 %v3950_v0  ;;  %3395 = vmatprep.mubr.msk.f32.mxu1 %vm3951_vm0, %v3952_v1 }
 0xe51   :  { %3608 = vmatpush3.bf16.msra.mxu0 %v4134_v39  ;;  %3614 = vmatpush3.bf16.msra.mxu1 %v4138_v40 }
 0xe52   :  { %3615 = vmatprep.subr.bf16.mxu0 %v3950_v0  ;;  %3621 = vmatprep.subr.bf16.mxu1 %v3950_v0 }
 0xf17   :  { %v1745_v52 = vpop.f32.mrb[20].mxu1 }
 0xf18   :  { %v3346_v53 = vpop.f32.mrb[21].mxu1 }
 0xf1b   :  { %v1820_v54 = vpop.f32.mrb[16].mxu0 }
 0xf1c   :  { %v1821_v55 = vadd.f32 %v1820_v54, %v1745_v52  ;;  %v3357_v56 = vpop.f32.mrb[17].mxu0 }
 0xf1e   :  { %v1824_v57 = vadd.f32 %v4176_v48, %v1821_v55 }
 0xf1f   :  { %v1915_v58 = vpop.f32.mrb[22].mxu1  ;;  %v1988_v59 = vpop.f32.mrb[18].mxu0 }
 0xf20   :  { %3732 = vtanh.f32 %v1824_v57  ;;  %v3368_v60 = vpop.f32.mrb[23].mxu1  ;;  %v1989_v61 = vadd.f32 %v1988_v59, %v1915_v58  ;;  %v3375_v62 = vpop.f32.mrb[19].mxu0  ;;  %v1825_v4 = vmul.f32 0.5, %v1824_v57 }
 0xf22   :  { %v1992_v63 = vadd.f32 %v4121_v14, %v1989_v61 }
 0xf24   :  { %3734 = vtanh.f32 %v1992_v63  ;;  %v1993_v6 = vmul.f32 0.5, %v1992_v63 }
 0xf25   :  { %3736 = vtanh.f32 %v1825_v4 }
 0xf26   :  { %3738 = vtanh.f32 %v1993_v6 }
 0xf2a   :  { %v3733_v2 = vpop.eup %3732 }
 0xf2b   :  { %1832 = vrot.lane.b32.xlu0 %v3733_v2, %s3953_s20 }
 0xf2e   :  { %v3735_v3 = vpop.eup %3734 }
 0xf2f   :  { %2000 = vrot.lane.b32.xlu1 %v3735_v3, %s3953_s20  ;;  %v3737_v7 = vpop.eup %3736 }
 0xf30   :  { %v1827_v8 = vmul.f32 0.5, %v3737_v7  ;;  %v3739_v11 = vpop.eup %3738 }
 0xf31   :  { %v1995_v13 = vmul.f32 0.5, %v3739_v11 }
 0xf32   :  { %v1828_v12 = vadd.f32 0.5, %v1827_v8 }
 0xf33   :  { %v1996_v17 = vadd.f32 0.5, %v1995_v13 }
 0xf34   :  { %v1830_v20 = vmul.f32 %v1828_v12, %v4316_v35  ;;  %v2189_v35 = vld [vmem:[#allocation2 + $0xc] sm:$0x3] }
 0xf35   :  { %v1998_v23 = vmul.f32 %v1996_v17, %v4320_v41 }
 0xf9d   :  { %v1833_v15 = vpop.permute.xlu0 %1832 }
 0xf9e   :  { %v1835_v16 = vmul.f32 %v1833_v15, %v1828_v12 }
 0xfa0   :  { %1837 = vrot.lane.b32.xlu0 %v1835_v16, %s3945_s4 }
 0xfa1   :  { %v2001_v18 = vpop.permute.xlu1 %2000 }
 0xfa2   :  { %v2003_v19 = vmul.f32 %v2001_v18, %v1996_v17 }
 0xfa4   :  { %2005 = vrot.lane.b32.xlu1 %v2003_v19, %s3945_s4 }
0x1012   :  { %v1838_v21 = vpop.permute.xlu0 %1837 }
0x1013   :  { %v4360_v22 = vadd.f32 %v1838_v21, %v1830_v20  ;;  %v2530_v21 = vld [vmem:[#allocation2 + $0xe] sm:$0x3] }
0x1015   :  { %3740 = vtanh.f32 %v4360_v22 }
0x1016   :  { %v2006_v24 = vpop.permute.xlu1 %2005 }
0x1017   :  { %v4364_v25 = vadd.f32 %v2006_v24, %v1998_v23 }
0x1019   :  { %3742 = vtanh.f32 %v4364_v25 }
0x101f   :  { %v3741_v26 = vpop.eup %3740 }
0x1020   :  { %1843 = vrot.lane.b32.xlu0 %v3741_v26, %s3953_s20 }
0x1023   :  { %v3743_v27 = vpop.eup %3742 }
0x1024   :  { %2011 = vrot.lane.b32.xlu1 %v3743_v27, %s3953_s20 }
0x1092   :  { %v1844_v28 = vpop.permute.xlu0 %1843 }
0x1093   :  { %v1846_v29 = vmul.f32 %v1844_v28, %v1828_v12 }
0x1095   :  { %2016 = vrot.lane.b32.xlu0 %v1846_v29, %s3945_s4 }
0x1096   :  { %v2012_v30 = vpop.permute.xlu1 %2011 }
0x1097   :  { %v2014_v31 = vmul.f32 %v2012_v30, %v1996_v17 }
0x1099   :  { %2091 = vrot.lane.b32.xlu1 %v2014_v31, %s3945_s4 }
0x1107   :  { %v2017_v33 = vpop.permute.xlu0 %2016 }
0x1108   :  { %3385 = vmatmul.mubr.msk.f32.vlgmr.msra.gmra.mrb[20].mxu0 %vm132_vm2, %v2017_v33 }
0x1109   :  { %3617 = vmatpush3.bf16.msra.mxu0 %v4100_v5  ;;  %3406 = vmatprep.mubr.msk.f32.mxu0 %vm3951_vm0, %v3952_v1 }
0x110a   :  { %3618 = vmatprep.subr.bf16.mxu0 %v3950_v0 }
0x110b   :  { %v2092_v34 = vpop.permute.xlu1 %2091 }
0x110c   :  { %3396 = vmatmul.mubr.msk.f32.vlgmr.msra.gmra.mrb[24].mxu1 %vm132_vm2, %v2092_v34 }
0x110d   :  { %3620 = vmatpush3.bf16.msra.mxu0 %v4105_v10  ;;  %3623 = vmatpush3.bf16.msra.mxu1 %v4102_v9 }
0x110e   :  { %3413 = vmatprep.mubr.msk.f32.mxu1 %vm3951_vm0, %v3952_v1  ;;  %3624 = vmatprep.subr.bf16.mxu1 %v3950_v0 }
0x110f   :  { %3630 = vmatprep.subr.bf16.mxu0 %v3950_v0 }
0x1110   :  { %3407 = vmatmul.mubr.msk.f32.vlgmr.msra.gmra.mrb[22].mxu0 %vm132_vm2, %v2092_v34  ;;  %3414 = vmatmul.mubr.msk.f32.vlgmr.msra.gmra.mrb[26].mxu1 %vm206_vm1, %v2189_v35 }
0x1111   :  { %3626 = vmatpush3.bf16.msra.mxu1 %v4129_v32  ;;  %3632 = vmatpush3.bf16.msra.mxu0 %v4131_v36 }
0x1112   :  { %3627 = vmatprep.subr.bf16.mxu1 %v3950_v0  ;;  %3424 = vmatprep.mubr.msk.f32.mxu1 %vm3951_vm0, %v3952_v1 }
0x1113   :  { %3633 = vmatprep.subr.bf16.mxu0 %v3950_v0  ;;  %3435 = vmatprep.mubr.msk.f32.mxu0 %vm3951_vm0, %v3952_v1 }
0x1115   :  { %3629 = vmatpush3.bf16.msra.mxu1 %v4134_v39  ;;  %3635 = vmatpush3.bf16.msra.mxu0 %v4138_v40 }
0x1116   :  { %3636 = vmatprep.subr.bf16.mxu1 %v3950_v0  ;;  %3642 = vmatprep.subr.bf16.mxu0 %v3950_v0 }
0x11db   :  { %v2086_v37 = vpop.f32.mrb[20].mxu0 }
0x11dc   :  { %v3386_v38 = vpop.f32.mrb[21].mxu0 }
0x11df   :  { %v2161_v41 = vpop.f32.mrb[24].mxu1 }
0x11e0   :  { %v2162_v42 = vadd.f32 %v2161_v41, %v2086_v37  ;;  %v3397_v43 = vpop.f32.mrb[25].mxu1 }
0x11e2   :  { %v2165_v44 = vadd.f32 %v4176_v48, %v2162_v42 }
0x11e3   :  { %v2256_v45 = vpop.f32.mrb[22].mxu0  ;;  %v2329_v46 = vpop.f32.mrb[26].mxu1 }
0x11e4   :  { %3744 = vtanh.f32 %v2165_v44  ;;  %v3408_v47 = vpop.f32.mrb[23].mxu0  ;;  %v2330_v49 = vadd.f32 %v2329_v46, %v2256_v45  ;;  %v3415_v50 = vpop.f32.mrb[27].mxu1  ;;  %v2166_v54 = vmul.f32 0.5, %v2165_v44 }
0x11e6   :  { %v2333_v51 = vadd.f32 %v4121_v14, %v2330_v49 }
0x11e8   :  { %3746 = vtanh.f32 %v2333_v51  ;;  %v2334_v55 = vmul.f32 0.5, %v2333_v51 }
0x11e9   :  { %3748 = vtanh.f32 %v2166_v54 }
0x11ea   :  { %3750 = vtanh.f32 %v2334_v55 }
0x11ee   :  { %v3745_v52 = vpop.eup %3744 }
0x11ef   :  { %2173 = vrot.lane.b32.xlu0 %v3745_v52, %s3953_s20 }
0x11f2   :  { %v3747_v53 = vpop.eup %3746 }
0x11f3   :  { %2341 = vrot.lane.b32.xlu1 %v3747_v53, %s3953_s20  ;;  %v3749_v56 = vpop.eup %3748 }
0x11f4   :  { %v2168_v57 = vmul.f32 0.5, %v3749_v56  ;;  %v3751_v58 = vpop.eup %3750 }
0x11f5   :  { %v2336_v60 = vmul.f32 0.5, %v3751_v58 }
0x11f6   :  { %v2169_v59 = vadd.f32 0.5, %v2168_v57 }
0x11f7   :  { %v2337_v14 = vadd.f32 0.5, %v2336_v60 }
0x11f8   :  { %v2171_v3 = vmul.f32 %v2169_v59, %v4360_v22 }
0x11f9   :  { %v2339_v7 = vmul.f32 %v2337_v14, %v4364_v25 }
0x1261   :  { %v2174_v61 = vpop.permute.xlu0 %2173 }
0x1262   :  { %v2176_v62 = vmul.f32 %v2174_v61, %v2169_v59 }
0x1264   :  { %2178 = vrot.lane.b32.xlu0 %v2176_v62, %s3945_s4 }
0x1265   :  { %v2342_v63 = vpop.permute.xlu1 %2341 }
0x1266   :  { %v2344_v2 = vmul.f32 %v2342_v63, %v2337_v14 }
0x1268   :  { %2346 = vrot.lane.b32.xlu1 %v2344_v2, %s3945_s4  ;;  %v3775_v2 = vld [vmem:[%s4488_s6] ss:$0 sm:$0xff] }
0x12d6   :  { %v2179_v4 = vpop.permute.xlu0 %2178 }
0x12d7   :  { %v4404_v6 = vadd.f32 %v2179_v4, %v2171_v3 }
0x12d9   :  { %3752 = vtanh.f32 %v4404_v6 }
0x12da   :  { %v2347_v8 = vpop.permute.xlu1 %2346 }
0x12db   :  { %v4408_v11 = vadd.f32 %v2347_v8, %v2339_v7 }
0x12dd   :  { %3754 = vtanh.f32 %v4408_v11 }
0x12e3   :  { %v3753_v12 = vpop.eup %3752 }
0x12e4   :  { %2184 = vrot.lane.b32.xlu0 %v3753_v12, %s3953_s20 }
0x12e7   :  { %v3755_v13 = vpop.eup %3754 }
0x12e8   :  { %2352 = vrot.lane.b32.xlu1 %v3755_v13, %s3953_s20 }
0x1356   :  { %v2185_v15 = vpop.permute.xlu0 %2184 }
0x1357   :  { %v2187_v16 = vmul.f32 %v2185_v15, %v2169_v59 }
0x1359   :  { %2357 = vrot.lane.b32.xlu0 %v2187_v16, %s3945_s4 }
0x135a   :  { %v2353_v17 = vpop.permute.xlu1 %2352 }
0x135b   :  { %v2355_v18 = vmul.f32 %v2353_v17, %v2337_v14  ;;  %v2870_v17 = vld [vmem:[#allocation11] sm:$0xff] }
0x135d   :  { %2432 = vrot.lane.b32.xlu1 %v2355_v18, %s3945_s4  ;;  %v2871_v18 = vld [vmem:[#allocation11 + $0x8] sm:$0xff] }
0x13cb   :  { %v2358_v19 = vpop.permute.xlu0 %2357 }
0x13cc   :  { %3425 = vmatmul.mubr.msk.f32.vlgmr.msra.gmra.mrb[28].mxu1 %vm132_vm2, %v2358_v19  ;;  %v2872_v19 = vld [vmem:[#allocation11 + $0x10] sm:$0xff] }
0x13cd   :  { %3638 = vmatpush3.bf16.msra.mxu1 %v4100_v5  ;;  %3446 = vmatprep.mubr.msk.f32.mxu1 %vm3951_vm0, %v3952_v1 }
0x13ce   :  { %3639 = vmatprep.subr.bf16.mxu1 %v3950_v0 }
0x13cf   :  { %v2433_v20 = vpop.permute.xlu1 %2432 }
0x13d0   :  { %3436 = vmatmul.mubr.msk.f32.vlgmr.msra.gmra.mrb[24].mxu0 %vm132_vm2, %v2433_v20 }
0x13d1   :  { %3641 = vmatpush3.bf16.msra.mxu1 %v4105_v10  ;;  %3644 = vmatpush3.bf16.msra.mxu0 %v4102_v9 }
0x13d2   :  { %3453 = vmatprep.mubr.msk.f32.mxu0 %vm3951_vm0, %v3952_v1  ;;  %3645 = vmatprep.subr.bf16.mxu0 %v3950_v0 }
0x13d3   :  { %3651 = vmatprep.subr.bf16.mxu1 %v3950_v0 }
0x13d4   :  { %3447 = vmatmul.mubr.msk.f32.vlgmr.msra.gmra.mrb[30].mxu1 %vm132_vm2, %v2433_v20  ;;  %3454 = vmatmul.mubr.msk.f32.vlgmr.msra.gmra.mrb[26].mxu0 %vm206_vm1, %v2530_v21  ;;  %v3658_v20 = vpack.c.bf16 %v2871_v18, %v2870_v17  ;;  %v2873_v21 = vld [vmem:[#allocation11 + $0x18] sm:$0xff] }
0x13d5   :  { %3647 = vmatpush3.bf16.msra.mxu0 %v4129_v32  ;;  %3653 = vmatpush3.bf16.msra.mxu1 %v4131_v36 }
0x13d6   :  { %3648 = vmatprep.subr.bf16.mxu0 %v3950_v0  ;;  %3464 = vmatprep.mubr.msk.f32.mxu0 %vm3951_vm0, %v3952_v1 }
0x13d7   :  { %3654 = vmatprep.subr.bf16.mxu1 %v3950_v0  ;;  %3475 = vmatprep.mubr.msk.f32.mxu1 %vm3951_vm0, %v3952_v1 }
0x13d9   :  { %3650 = vmatpush3.bf16.msra.mxu0 %v4134_v39  ;;  %3656 = vmatpush3.bf16.msra.mxu1 %v4138_v40  ;;  %v3774_v39 = vld [vmem:[%s4485_s3] ss:$0 sm:$0xff] }
0x13da   :  { %3657 = vmatprep.subr.bf16.mxu0 %v3950_v0 }
0x149f   :  { %v2427_v5 = vpop.f32.mrb[28].mxu1 }
0x14a0   :  { %v3426_v9 = vpop.f32.mrb[29].mxu1 }
0x14a3   :  { %v2502_v10 = vpop.f32.mrb[24].mxu0 }
0x14a4   :  { %v2503_v32 = vadd.f32 %v2502_v10, %v2427_v5  ;;  %v3437_v36 = vpop.f32.mrb[25].mxu0  ;;  %v3661_v5 = vpack.c.bf16 %v2873_v21, %v2872_v19 }
0x14a6   :  { %v2506_v22 = vadd.f32 %v4176_v48, %v2503_v32 }
0x14a7   :  { %v2597_v23 = vpop.f32.mrb[30].mxu1  ;;  %v2670_v24 = vpop.f32.mrb[26].mxu0 }
0x14a8   :  { %3756 = vtanh.f32 %v2506_v22  ;;  %v3448_v25 = vpop.f32.mrb[31].mxu1  ;;  %v2671_v26 = vadd.f32 %v2670_v24, %v2597_v23  ;;  %v3455_v27 = vpop.f32.mrb[27].mxu0  ;;  %v2507_v30 = vmul.f32 0.5, %v2506_v22  ;;  %v3007_v22 = vld [vmem:[%s4490_s8] ss:$0 sm:$0xff] }
0x14aa   :  { %v2674_v40 = vadd.f32 %v3774_v39, %v2671_v26 }
0x14ac   :  { %3758 = vtanh.f32 %v2674_v40  ;;  %v2675_v48 = vmul.f32 0.5, %v2674_v40 }
0x14ad   :  { %3760 = vtanh.f32 %v2507_v30 }
0x14ae   :  { %3762 = vtanh.f32 %v2675_v48 }
0x14b2   :  { %v3757_v28 = vpop.eup %3756 }
0x14b3   :  { %2514 = vrot.lane.b32.xlu0 %v3757_v28, %s3953_s20 }
0x14b6   :  { %v3759_v29 = vpop.eup %3758 }
0x14b7   :  { %2682 = vrot.lane.b32.xlu1 %v3759_v29, %s3953_s20  ;;  %v3761_v31 = vpop.eup %3760 }
0x14b8   :  { %v2509_v33 = vmul.f32 0.5, %v3761_v31  ;;  %v3763_v34 = vpop.eup %3762 }
0x14b9   :  { %v2677_v37 = vmul.f32 0.5, %v3763_v34 }
0x14ba   :  { %v2510_v35 = vadd.f32 0.5, %v2509_v33 }
0x14bb   :  { %v2678_v42 = vadd.f32 0.5, %v2677_v37 }
0x14bc   :  { %v2512_v45 = vmul.f32 %v2510_v35, %v4404_v6 }
0x14bd   :  { %v2680_v49 = vmul.f32 %v2678_v42, %v4408_v11 }
0x1525   :  { %v2515_v38 = vpop.permute.xlu0 %2514 }
0x1526   :  { %v2517_v41 = vmul.f32 %v2515_v38, %v2510_v35 }
0x1528   :  { %2519 = vrot.lane.b32.xlu0 %v2517_v41, %s3945_s4 }
0x1529   :  { %v2683_v43 = vpop.permute.xlu1 %2682 }
0x152a   :  { %v2685_v44 = vmul.f32 %v2683_v43, %v2678_v42 }
0x152c   :  { %2687 = vrot.lane.b32.xlu1 %v2685_v44, %s3945_s4 }
0x159a   :  { %v2520_v46 = vpop.permute.xlu0 %2519 }
0x159b   :  { %v2522_v47 = vadd.f32 %v2520_v46, %v2512_v45 }
0x159d   :  { %3764 = vtanh.f32 %v2522_v47 }
0x159e   :  { %v2688_v50 = vpop.permute.xlu1 %2687 }
0x159f   :  { %v2690_v51 = vadd.f32 %v2688_v50, %v2680_v49 }
0x15a1   :  { %3766 = vtanh.f32 %v2690_v51 }
0x15a7   :  { %v3765_v52 = vpop.eup %3764 }
0x15a8   :  { %2525 = vrot.lane.b32.xlu0 %v3765_v52, %s3953_s20 }
0x15ab   :  { %v3767_v53 = vpop.eup %3766 }
0x15ac   :  { %2693 = vrot.lane.b32.xlu1 %v3767_v53, %s3953_s20 }
0x161a   :  { %v2526_v54 = vpop.permute.xlu0 %2525 }
0x161b   :  { %v2528_v55 = vmul.f32 %v2526_v54, %v2510_v35 }
0x161d   :  { %2698 = vrot.lane.b32.xlu0 %v2528_v55, %s3945_s4 }
0x161e   :  { %v2694_v56 = vpop.permute.xlu1 %2693 }
0x161f   :  { %v2696_v57 = vmul.f32 %v2694_v56, %v2678_v42 }
0x1621   :  { %2773 = vrot.lane.b32.xlu1 %v2696_v57, %s3945_s4 }
0x168f   :  { %v2699_v58 = vpop.permute.xlu0 %2698 }
0x1690   :  { %3465 = vmatmul.mubr.msk.f32.vlgmr.msra.gmra.mrb[28].mxu0 %vm132_vm2, %v2699_v58 }
0x1691   :  { %3486 = vmatprep.mubr.msk.f32.mxu0 %vm3951_vm0, %v3952_v1  ;;  %3659 = vmatpush3.bf16.msra.mxu0 %v3658_v20 }
0x1692   :  { %3660 = vmatprep.subr.bf16.mxu0 %v3950_v0 }
0x1693   :  { %v2774_v59 = vpop.permute.xlu1 %2773 }
0x1694   :  { %3476 = vmatmul.mubr.msk.f32.vlgmr.msra.gmra.mrb[32].mxu1 %vm132_vm2, %v2774_v59 }
0x1695   :  { %3662 = vmatpush3.bf16.msra.mxu0 %v3661_v5 }
0x1763   :  { %v2768_v60 = vpop.f32.mrb[28].mxu0 }
0x1764   :  { %v3466_v61 = vpop.f32.mrb[29].mxu0 }
0x1767   :  { %v2843_v62 = vpop.f32.mrb[32].mxu1 }
0x1768   :  { %v2844_v14 = vadd.f32 %v2843_v62, %v2768_v60  ;;  %v3477_v63 = vpop.f32.mrb[33].mxu1 }
0x176a   :  { %v2847_v3 = vadd.f32 %v3775_v2, %v2844_v14 }
0x176c   :  { %3768 = vtanh.f32 %v2847_v3  ;;  %v2848_v6 = vmul.f32 0.5, %v2847_v3 }
0x176e   :  { %3770 = vtanh.f32 %v2848_v6 }
0x1776   :  { %v3769_v4 = vpop.eup %3768 }
0x1777   :  { %2855 = vrot.lane.b32.xlu0 %v3769_v4, %s3953_s20 }
0x1778   :  { %v3771_v1 = vpop.eup %3770 }
0x1779   :  { %v2850_v7 = vmul.f32 0.5, %v3771_v1 }
0x177b   :  { %v2851_v8 = vadd.f32 0.5, %v2850_v7 }
0x177d   :  { %v2853_v13 = vmul.f32 %v2851_v8, %v2522_v47 }
0x17e9   :  { %v2856_v11 = vpop.permute.xlu0 %2855 }
0x17ea   :  { %v2858_v12 = vmul.f32 %v2856_v11, %v2851_v8 }
0x17ec   :  { %2860 = vrot.lane.b32.xlu1 %v2858_v12, %s3945_s4 }
0x185e   :  { %v2861_v15 = vpop.permute.xlu1 %2860 }
0x185f   :  { %v2863_v16 = vadd.f32 %v2861_v15, %v2853_v13 }
0x1861   :  { %3772 = vtanh.f32 %v2863_v16 }
0x186b   :  { %v3773_v9 = vpop.eup %3772 }
0x186c   :  { %2866 = vrot.lane.b32.xlu0 %v3773_v9, %s3953_s20 }
0x18de   :  { %v2867_v10 = vpop.permute.xlu0 %2866 }
0x18df   :  { %v2869_v32 = vmul.f32 %v2867_v10, %v2851_v8 }
0x18e1   :  { %2882 = vrot.lane.b32.xlu1 %v2869_v32, %s3945_s4 }
0x1953   :  { %v2883_v36 = vpop.permute.xlu1 %2882 }
0x1954   :  { %3487 = vmatmul.mubr.msk.f32.vlgmr.msra.gmra.mrb[30].mxu0 %vm132_vm2, %v2883_v36 }
0x1a27   :  { %v2952_v23 = vpop.f32.mrb[30].mxu0 }
0x1a28   :  { %v2953_v24 = vadd.f32 %v3007_v22, %v2952_v23  ;;  %v3488_v0 = vpop.f32.mrb[31].mxu0 }
0x1a2a   :  { %2956 = vst [vmem:[#allocation13] sm:$0x3] %v2953_v24 }
0x1a2b   :  { %3919 = shalt.err (!%p3916_p10)
}
0x1a2c   :  { %s3920_s30 = scalar_lea.hbm %s4491_s9, 32 }
0x1a2d   :  { %p3921_p11 = scmp.ne.s32.totalorder %s4491_s9, %s3920_s30  ;;  %p3924_p12 = scmp.lt.u32.totalorder %s3920_s30, %s4491_s9 }
0x1a2f   :  { %p3926_p13 = pnand %p3924_p12, %p3921_p11 }
0x1a31   :  { %3929 = shalt.err (!%p3926_p13)
}
0x1a32   :  { %2966 = dma.vmem_to_hbm [thread:$0]  %s2964_s28, 32, %s4491_s9, [#allocation4]  }
0x1a33   :  { %3938 = dma.done.wait [#allocation4], 32  }
0x1a34   :  { %3939 = vsyncadd [#allocation4], 4294967264 }
0x1a35   :  { %2970 = vsyncpa [#allocation3], 1 }
0x1a36   :  { %2971 = vsyncpa [#allocation6], 1 }
0x1a37   :  { %2972 = vsyncpa [#allocation9], 1 }
0x1a38   :  { %2973 = vsyncpa [#allocation12], 1 }
0x1a39   :  { %2974 = vsyncpa [#allocation4], 1 }

</bundles_post_ra>
